<compile_context>
chip_gen: v5e
topology: v5e:2x2
jax: 0.10.0
libtpu: 0.0.40
codegen_flags: <defaults>
</compile_context>

<pallas_src>
import functools

import jax
import jax.numpy as jnp
from jax.experimental import pallas as pl
from jax.experimental.pallas import tpu as pltpu

_VMEM_LIMIT = 32 * 1024 * 1024   # explicit scoped-VMEM budget (safe on v5e/v6e/v7x)
_COMPUTE_DTYPE = jnp.bfloat16    # MXU operand dtype (accumulation stays f32)


def _pick_tile(dim, desired, align):
    """Largest `align`-aligned tile <= desired that divides dim, else full dim."""
    if dim <= desired:
        return dim
    t = (desired // align) * align
    while t >= align:
        if dim % t == 0:
            return t
        t -= align
    return dim


# ---------------------------------------------------------------------------
# Kernel 1: fused QKV projection.
#   y[g] = x @ W[g] + b[g] for all g in [0, 3H) in ONE pass over x.
#   grid = (M/tm, K/tk); K innermost / "arbitrary"; (3H, tm, D) f32 scratch.
# ---------------------------------------------------------------------------
def _qkv_projection_kernel(x_ref, w_ref, b_ref, o_ref, acc_ref, *, num_groups):
    k = pl.program_id(1)

    @pl.when(k == 0)
    def _():
        acc_ref[...] = jnp.zeros_like(acc_ref)

    x = x_ref[...]                                   # (tm, tk) bf16
    for g in range(num_groups):                      # static unroll over 3H groups
        acc_ref[g] += jnp.dot(x, w_ref[g], preferred_element_type=jnp.float32)

    @pl.when(k == pl.num_programs(1) - 1)
    def _():
        o_ref[...] = (acc_ref[...] + b_ref[...]).astype(o_ref.dtype)


def qkv_projection(x, w_g, b_g, *, tm=256, tk=512):
    """x: (M, K) bf16; w_g: (G, K, D) bf16; b_g: (G, 1, D) f32 -> (G, M, D) bf16."""
    m, kdim = x.shape
    g, _, d = w_g.shape
    tm = _pick_tile(m, tm, 16)
    tk = _pick_tile(kdim, tk, 128)
    grid = (m // tm, kdim // tk)
    flops = 2 * m * kdim * g * d
    bytes_accessed = 2 * (m * kdim + (m // tm) * g * kdim * d + g * m * d)
    return pl.pallas_call(
        functools.partial(_qkv_projection_kernel, num_groups=g),
        out_shape=jax.ShapeDtypeStruct((g, m, d), x.dtype),
        grid_spec=pltpu.PrefetchScalarGridSpec(
            num_scalar_prefetch=0,
            grid=grid,
            in_specs=[
                pl.BlockSpec((tm, tk), lambda i, k: (i, k)),
                pl.BlockSpec((g, tk, d), lambda i, k: (0, k, 0)),
                pl.BlockSpec((g, 1, d), lambda i, k: (0, 0, 0)),
            ],
            out_specs=pl.BlockSpec((g, tm, d), lambda i, k: (0, i, 0)),
            scratch_shapes=[pltpu.VMEM((g, tm, d), jnp.float32)],
        ),
        compiler_params=pltpu.CompilerParams(
            dimension_semantics=("parallel", "arbitrary"),
            vmem_limit_bytes=_VMEM_LIMIT),
        cost_estimate=pl.CostEstimate(flops=flops, transcendentals=0,
                                      bytes_accessed=bytes_accessed),
    )(x, w_g, b_g)


# ---------------------------------------------------------------------------
# Kernel 2: flash attention (online softmax), ONE head per grid step.
#   qkv_heads: (3, H, B, S, D) bf16; grid = (B, H, S/tq, S/tkv), KV innermost.
#   Per-head (tq, tkv) scores keep vreg pressure low; m/l/acc f32 scratch.
# ---------------------------------------------------------------------------
def _flash_attn_kernel(q_ref, k_ref, v_ref, o_ref, m_sc, l_sc, acc_sc):
    ki = pl.program_id(3)

    @pl.when(ki == 0)
    def _():
        m_sc[...] = jnp.full_like(m_sc, -jnp.inf)
        l_sc[...] = jnp.zeros_like(l_sc)
        acc_sc[...] = jnp.zeros_like(acc_sc)

    q = q_ref[0, 0, 0]             # (tq, D) bf16; 1/sqrt(D) pre-folded into W_q
    k = k_ref[0, 0, 0]             # (tkv, D) bf16
    v = v_ref[0, 0, 0]             # (tkv, D) bf16

    # scores: contract on D without transposing k (MXU, f32 accumulation)
    s = jax.lax.dot_general(q, k, (((1,), (1,)), ((), ())),
                            preferred_element_type=jnp.float32)   # (tq, tkv)

    m_prev = m_sc[...]
    m_new = jnp.maximum(m_prev, jnp.max(s, axis=-1, keepdims=True))
    alpha = jnp.exp(m_prev - m_new)
    p = jnp.exp(s - m_new)
    l_sc[...] = alpha * l_sc[...] + jnp.sum(p, axis=-1, keepdims=True)
    acc_sc[...] = alpha * acc_sc[...] + jnp.dot(
        p.astype(v.dtype), v, preferred_element_type=jnp.float32)
    m_sc[...] = m_new

    @pl.when(ki == pl.num_programs(3) - 1)
    def _():
        inv_l = pl.reciprocal(l_sc[...], approx=True)   # EUP; output is bf16
        o_ref[0, 0] = (acc_sc[...] * inv_l).astype(o_ref.dtype)


def flash_mha(qkv_heads, *, tq=256, tkv=256):
    """qkv_heads: (3, H, B, S, D) -> context (H, B, S, D)."""
    _, h, b, s, d = qkv_heads.shape
    tq = _pick_tile(s, tq, 16)
    tkv = _pick_tile(s, tkv, 16)
    grid = (b, h, s // tq, s // tkv)
    q_spec = pl.BlockSpec((1, 1, 1, tq, d),
                          lambda bi, hi, qi, ki: (0, hi, bi, qi, 0))
    k_spec = pl.BlockSpec((1, 1, 1, tkv, d),
                          lambda bi, hi, qi, ki: (1, hi, bi, ki, 0))
    v_spec = pl.BlockSpec((1, 1, 1, tkv, d),
                          lambda bi, hi, qi, ki: (2, hi, bi, ki, 0))
    o_spec = pl.BlockSpec((1, 1, tq, d),
                          lambda bi, hi, qi, ki: (hi, bi, qi, 0))
    flops = 4 * b * h * s * s * d
    transc = b * h * s * s
    bytes_accessed = 2 * b * h * s * d * (2 + 2 * (s // tq))
    return pl.pallas_call(
        _flash_attn_kernel,
        out_shape=jax.ShapeDtypeStruct((h, b, s, d), qkv_heads.dtype),
        grid_spec=pltpu.PrefetchScalarGridSpec(
            num_scalar_prefetch=0,
            grid=grid,
            in_specs=[q_spec, k_spec, v_spec],
            out_specs=o_spec,
            scratch_shapes=[
                pltpu.VMEM((tq, 1), jnp.float32),   # running max
                pltpu.VMEM((tq, 1), jnp.float32),   # running denominator
                pltpu.VMEM((tq, d), jnp.float32),   # running numerator
            ],
        ),
        compiler_params=pltpu.CompilerParams(
            dimension_semantics=("parallel", "parallel", "parallel",
                                 "arbitrary"),
            vmem_limit_bytes=_VMEM_LIMIT),
        cost_estimate=pl.CostEstimate(flops=flops, transcendentals=transc,
                                      bytes_accessed=bytes_accessed),
    )(qkv_heads, qkv_heads, qkv_heads)


# ---------------------------------------------------------------------------
# Kernel 3: output projection.  One grid step per (tm, tn) output tile; the
#   full contraction depth K = H*D is done in-kernel (static loop over heads),
#   so stores are lane-dense and there is no per-head grid-step overhead.
#   out = sum_h ctx[h] @ W_o[h] + b,  ctx: (H, M, D), W_o: (H, D, E)
# ---------------------------------------------------------------------------
def _o_projection_kernel(x_ref, w_ref, b_ref, o_ref, acc_ref, *, num_heads):
    acc_ref[...] = jnp.zeros_like(acc_ref)
    for h in range(num_heads):                     # static unroll, full-depth K
        acc_ref[...] += jnp.dot(x_ref[h], w_ref[h],
                                preferred_element_type=jnp.float32)
    o_ref[...] = (acc_ref[...] + b_ref[...]).astype(o_ref.dtype)


def o_projection(x_h, w_h, b2, out_dtype, *, tm=256, tn=256):
    """x_h: (H, M, D) bf16; w_h: (H, D, N) bf16; b2: (1, N) f32 -> (M, N)."""
    h, m, d = x_h.shape
    _, _, n = w_h.shape
    tm = _pick_tile(m, tm, 16)
    tn = _pick_tile(n, tn, 128)
    grid = (m // tm, n // tn)
    flops = 2 * h * m * d * n
    bytes_accessed = 2 * ((n // tn) * h * m * d + (m // tm) * h * d * n) + 4 * m * n
    return pl.pallas_call(
        functools.partial(_o_projection_kernel, num_heads=h),
        out_shape=jax.ShapeDtypeStruct((m, n), out_dtype),
        grid_spec=pltpu.PrefetchScalarGridSpec(
            num_scalar_prefetch=0,
            grid=grid,
            in_specs=[
                pl.BlockSpec((h, tm, d), lambda i, j: (0, i, 0)),
                pl.BlockSpec((h, d, tn), lambda i, j: (0, 0, j)),
                pl.BlockSpec((1, tn), lambda i, j: (0, j)),
            ],
            out_specs=pl.BlockSpec((tm, tn), lambda i, j: (i, j)),
            scratch_shapes=[pltpu.VMEM((tm, tn), jnp.float32)],
        ),
        compiler_params=pltpu.CompilerParams(
            dimension_semantics=("parallel", "parallel"),
            vmem_limit_bytes=_VMEM_LIMIT),
        cost_estimate=pl.CostEstimate(flops=flops, transcendentals=0,
                                      bytes_accessed=bytes_accessed),
    )(x_h, w_h, b2)


# ---------------------------------------------------------------------------
# Full module forward
# ---------------------------------------------------------------------------
def attention_forward(x, params, num_heads):
    """x: (B, S, E) -> (B, S, E)."""
    b, s, e = x.shape
    h = num_heads
    d = e // h
    m = b * s

    # ---- weight-side prep only (tiny, one-time per call; no activation copies)
    # W_qkv (E, 3E) -> (3H, E, D): groups ordered (q|k|v)-major, head-major.
    scale = 1.0 / float(d) ** 0.5
    w_qkv_g = params["w_qkv"].reshape(e, 3, h, d).transpose(1, 2, 0, 3)
    w_qkv_g = w_qkv_g.reshape(3 * h, e, d)
    b_qkv_g = params["b_qkv"].reshape(3 * h, 1, d)
    # fold 1/sqrt(D) into the H query groups (weight-side, removes per-step VPU mul)
    w_qkv_g = w_qkv_g.at[:h].multiply(scale).astype(_COMPUTE_DTYPE)
    b_qkv_g = b_qkv_g.at[:h].multiply(scale)              # bias stays f32
    w_o_h = params["w_o"].reshape(h, d, e).astype(_COMPUTE_DTYPE)
    b_o = params["b_o"].reshape(1, e)                      # f32

    x2 = x.reshape(m, e).astype(_COMPUTE_DTYPE)

    # 1) fused QKV projection -> (3H, M, D) -> free reshape (3, H, B, S, D)
    qkv = qkv_projection(x2, w_qkv_g, b_qkv_g)
    qkv = qkv.reshape(3, h, b, s, d)

    # 2) per-head flash attention -> (H, B, S, D) -> free reshape (H, M, D)
    ctx = flash_mha(qkv)
    ctx = ctx.reshape(h, m, d)

    # 3) output projection (full-depth contraction over all heads) -> (M, E)
    out = o_projection(ctx, w_o_h, b_o, out_dtype=x.dtype)
    return out.reshape(b, s, e)


def init_params(key, embed_size):
    k1, k2, k3, k4 = jax.random.split(key, 4)
    scale = 1.0 / float(embed_size) ** 0.5
    return {
        # stored as [E_in, E_out] (transposed relative to torch nn.Linear)
        "w_qkv": jax.random.normal(k1, (embed_size, 3 * embed_size),
                                   jnp.float32) * scale,
        "b_qkv": jax.random.normal(k2, (3 * embed_size,), jnp.float32) * 0.01,
        "w_o": jax.random.normal(k3, (embed_size, embed_size),
                                 jnp.float32) * scale,
        "b_o": jax.random.normal(k4, (embed_size,), jnp.float32) * 0.01,
    }


if __name__ == "__main__":
    B, S, E, H = 2, 8, 32, 4          # batch, seq_len, embed_size, heads (toy)
    key = jax.random.PRNGKey(0)
    kx, kp = jax.random.split(key)
    x = jax.random.normal(kx, (B, S, E), jnp.float32)
    params = init_params(kp, E)

    fwd = jax.jit(functools.partial(attention_forward, num_heads=H))
    out = fwd(x, params)
    jax.block_until_ready(out)

    # pure-JAX f32 reference (standard MHA, the intended semantics)
    def ref(x, p):
        qkv = x.reshape(B * S, E) @ p["w_qkv"] + p["b_qkv"]
        qkv = qkv.reshape(B, S, 3 * E)
        q, k, v = jnp.split(qkv, 3, axis=-1)
        d = E // H

        def th(t):
            return t.reshape(B, S, H, d).transpose(0, 2, 1, 3)

        q, k, v = th(q), th(k), th(v)
        sc = jnp.einsum("bhqd,bhkd->bhqk", q, k) / jnp.sqrt(float(d))
        pa = jax.nn.softmax(sc, axis=-1)
        ctx = jnp.einsum("bhqk,bhkd->bhqd", pa, v)
        ctx = ctx.transpose(0, 2, 1, 3).reshape(B * S, E)
        return (ctx @ p["w_o"] + p["b_o"]).reshape(B, S, E)

    expected = ref(x, params)
    assert out.shape == (B, S, E)
    # tolerance sized for bf16 MXU operands (f32 accumulation); structural
    # errors would be O(1).
    err = float(jnp.max(jnp.abs(out - expected)))
    assert jnp.allclose(out, expected, atol=5e-2, rtol=5e-2), (
        f"mismatch vs reference: max abs err = {err}")
    print("KERNEL_OK")
</pallas_src>

<mosaic_0001>
module attributes {stable_mosaic.version = 11 : i64} {
  func.func @_flash_attn_kernel(%arg0: i32, %arg1: i32, %arg2: i32, %arg3: i32, %arg4: memref<1x1x1x8x8xbf16, #tpu.memory_space<vmem>>, %arg5: memref<1x1x1x8x8xbf16, #tpu.memory_space<vmem>>, %arg6: memref<1x1x1x8x8xbf16, #tpu.memory_space<vmem>>, %arg7: memref<1x1x8x8xbf16, #tpu.memory_space<vmem>>, %arg8: memref<8x1xf32, #tpu.memory_space<vmem>>, %arg9: memref<8x1xf32, #tpu.memory_space<vmem>>, %arg10: memref<8x8xf32, #tpu.memory_space<vmem>>) attributes {dimension_semantics = [#tpu.dimension_semantics<parallel>, #tpu.dimension_semantics<parallel>, #tpu.dimension_semantics<parallel>, #tpu.dimension_semantics<arbitrary>], iteration_bounds = array<i64: 2, 4, 1, 1>, scalar_prefetch = 0 : i64, scratch_operands = 3 : i64, tpu.core_type = #tpu.core_type<tc>, window_params = [{transform_indices = @transform_0, window_bounds = array<i64: 1, 1, 1, 8, 8>}, {transform_indices = @transform_1, window_bounds = array<i64: 1, 1, 1, 8, 8>}, {transform_indices = @transform_2, window_bounds = array<i64: 1, 1, 1, 8, 8>}, {transform_indices = @transform_3, window_bounds = array<i64: 1, 1, 8, 8>}]} {
    %c0_i32 = arith.constant 0 : i32
    %0 = arith.cmpi eq, %arg3, %c0_i32 : i32
    %1 = arith.extui %0 : i1 to i32
    %c0_i32_0 = arith.constant 0 : i32
    %2 = arith.cmpi ne, %1, %c0_i32_0 : i32
    scf.if %2 {
      %cst_32 = arith.constant 0xFF800000 : f32
      %36 = vector.broadcast %cst_32 : f32 to vector<8x1xf32>
      %c0_33 = arith.constant 0 : index
      %c0_34 = arith.constant 0 : index
      %37 = vector.load %arg8[%c0_33, %c0_34] : memref<8x1xf32, #tpu.memory_space<vmem>>, vector<8x1xf32>
      tpu.vector_store %arg8[%c0_33, %c0_34], %36 {strides = array<i32>} : memref<8x1xf32, #tpu.memory_space<vmem>>, vector<8x1xf32>,
      %cst_35 = arith.constant 0.000000e+00 : f32
      %38 = vector.broadcast %cst_35 : f32 to vector<8x1xf32>
      %c0_36 = arith.constant 0 : index
      %c0_37 = arith.constant 0 : index
      %39 = vector.load %arg9[%c0_36, %c0_37] : memref<8x1xf32, #tpu.memory_space<vmem>>, vector<8x1xf32>
      tpu.vector_store %arg9[%c0_36, %c0_37], %38 {strides = array<i32>} : memref<8x1xf32, #tpu.memory_space<vmem>>, vector<8x1xf32>,
      %cst_38 = arith.constant 0.000000e+00 : f32
      %40 = vector.broadcast %cst_38 : f32 to vector<8x8xf32>
      %c0_39 = arith.constant 0 : index
      %c0_40 = arith.constant 0 : index
      %41 = vector.load %arg10[%c0_39, %c0_40] : memref<8x8xf32, #tpu.memory_space<vmem>>, vector<8x8xf32>
      tpu.vector_store %arg10[%c0_39, %c0_40], %40 {strides = array<i32>} : memref<8x8xf32, #tpu.memory_space<vmem>>, vector<8x8xf32>,
    } else {
    }
    %c0 = arith.constant 0 : index
    %c0_1 = arith.constant 0 : index
    %c0_2 = arith.constant 0 : index
    %c0_3 = arith.constant 0 : index
    %c0_4 = arith.constant 0 : index
    %3 = vector.load %arg4[%c0, %c0_1, %c0_2, %c0_3, %c0_4] : memref<1x1x1x8x8xbf16, #tpu.memory_space<vmem>>, vector<1x1x1x8x8xbf16>
    %4 = vector.shape_cast %3 : vector<1x1x1x8x8xbf16> to vector<8x8xbf16>
    %c0_5 = arith.constant 0 : index
    %c0_6 = arith.constant 0 : index
    %c0_7 = arith.constant 0 : index
    %c0_8 = arith.constant 0 : index
    %c0_9 = arith.constant 0 : index
    %5 = vector.load %arg5[%c0_5, %c0_6, %c0_7, %c0_8, %c0_9] : memref<1x1x1x8x8xbf16, #tpu.memory_space<vmem>>, vector<1x1x1x8x8xbf16>
    %6 = vector.shape_cast %5 : vector<1x1x1x8x8xbf16> to vector<8x8xbf16>
    %c0_10 = arith.constant 0 : index
    %c0_11 = arith.constant 0 : index
    %c0_12 = arith.constant 0 : index
    %c0_13 = arith.constant 0 : index
    %c0_14 = arith.constant 0 : index
    %7 = vector.load %arg6[%c0_10, %c0_11, %c0_12, %c0_13, %c0_14] : memref<1x1x1x8x8xbf16, #tpu.memory_space<vmem>>, vector<1x1x1x8x8xbf16>
    %8 = vector.shape_cast %7 : vector<1x1x1x8x8xbf16> to vector<8x8xbf16>
    %cst = arith.constant dense<0.000000e+00> : vector<8x8xf32>
    %9 = tpu.matmul %4, %6, %cst {dimension_numbers = #tpu.dot_dimension_numbers<[1], [1], [0], [0], [0, 0, 1, 0], [], []>} : vector<8x8xbf16>, vector<8x8xbf16>, vector<8x8xf32> -> vector<8x8xf32>
    %c0_15 = arith.constant 0 : index
    %c0_16 = arith.constant 0 : index
    %10 = vector.load %arg8[%c0_15, %c0_16] : memref<8x1xf32, #tpu.memory_space<vmem>>, vector<8x1xf32>
    %cst_17 = arith.constant dense<0xFF800000> : vector<8xf32>
    %11 = vector.multi_reduction <maximumf>, %9, %cst_17 [1] : vector<8x8xf32> to vector<8xf32>
    %12 = vector.shape_cast %11 : vector<8xf32> to vector<8x1xf32>
    %13 = arith.maximumf %10, %12 : vector<8x1xf32>
    %14 = arith.subf %10, %13 : vector<8x1xf32>
    %15 = math.exp %14 : vector<8x1xf32>
    %16 = vector.broadcast %13 : vector<8x1xf32> to vector<8x8xf32>
    %17 = arith.subf %9, %16 : vector<8x8xf32>
    %18 = math.exp %17 : vector<8x8xf32>
    %c0_18 = arith.constant 0 : index
    %c0_19 = arith.constant 0 : index
    %19 = vector.load %arg9[%c0_18, %c0_19] : memref<8x1xf32, #tpu.memory_space<vmem>>, vector<8x1xf32>
    %20 = arith.mulf %15, %19 : vector<8x1xf32>
    %cst_20 = arith.constant dense<0.000000e+00> : vector<8xf32>
    %21 = vector.multi_reduction <add>, %18, %cst_20 [1] : vector<8x8xf32> to vector<8xf32>
    %22 = vector.shape_cast %21 : vector<8xf32> to vector<8x1xf32>
    %23 = arith.addf %20, %22 : vector<8x1xf32>
    %c0_21 = arith.constant 0 : index
    %c0_22 = arith.constant 0 : index
    %24 = vector.load %arg9[%c0_21, %c0_22] : memref<8x1xf32, #tpu.memory_space<vmem>>, vector<8x1xf32>
    tpu.vector_store %arg9[%c0_21, %c0_22], %23 {strides = array<i32>} : memref<8x1xf32, #tpu.memory_space<vmem>>, vector<8x1xf32>,
    %c0_23 = arith.constant 0 : index
    %c0_24 = arith.constant 0 : index
    %25 = vector.load %arg10[%c0_23, %c0_24] : memref<8x8xf32, #tpu.memory_space<vmem>>, vector<8x8xf32>
    %26 = vector.broadcast %15 : vector<8x1xf32> to vector<8x8xf32>
    %27 = arith.mulf %26, %25 : vector<8x8xf32>
    %28 = arith.truncf %18 : vector<8x8xf32> to vector<8x8xbf16>
    %cst_25 = arith.constant dense<0.000000e+00> : vector<8x8xf32>
    %29 = tpu.matmul %28, %8, %cst_25 {dimension_numbers = #tpu.dot_dimension_numbers<[1], [0], [0], [1], [0, 0, 1, 1], [], []>} : vector<8x8xbf16>, vector<8x8xbf16>, vector<8x8xf32> -> vector<8x8xf32>
    %30 = arith.addf %27, %29 : vector<8x8xf32>
    %c0_26 = arith.constant 0 : index
    %c0_27 = arith.constant 0 : index
    %31 = vector.load %arg10[%c0_26, %c0_27] : memref<8x8xf32, #tpu.memory_space<vmem>>, vector<8x8xf32>
    tpu.vector_store %arg10[%c0_26, %c0_27], %30 {strides = array<i32>} : memref<8x8xf32, #tpu.memory_space<vmem>>, vector<8x8xf32>,
    %c0_28 = arith.constant 0 : index
    %c0_29 = arith.constant 0 : index
    %32 = vector.load %arg8[%c0_28, %c0_29] : memref<8x1xf32, #tpu.memory_space<vmem>>, vector<8x1xf32>
    tpu.vector_store %arg8[%c0_28, %c0_29], %13 {strides = array<i32>} : memref<8x1xf32, #tpu.memory_space<vmem>>, vector<8x1xf32>,
    %c0_i32_30 = arith.constant 0 : i32
    %33 = arith.cmpi eq, %arg3, %c0_i32_30 : i32
    %34 = arith.extui %33 : i1 to i32
    %c0_i32_31 = arith.constant 0 : i32
    %35 = arith.cmpi ne, %34, %c0_i32_31 : i32
    scf.if %35 {
      %c0_32 = arith.constant 0 : index
      %c0_33 = arith.constant 0 : index
      %36 = vector.load %arg9[%c0_32, %c0_33] : memref<8x1xf32, #tpu.memory_space<vmem>>, vector<8x1xf32>
      %37 = tpu.reciprocal %36 {approx = true} : vector<8x1xf32> -> vector<8x1xf32>
      %c0_34 = arith.constant 0 : index
      %c0_35 = arith.constant 0 : index
      %38 = vector.load %arg10[%c0_34, %c0_35] : memref<8x8xf32, #tpu.memory_space<vmem>>, vector<8x8xf32>
      %39 = vector.broadcast %37 : vector<8x1xf32> to vector<8x8xf32>
      %40 = arith.mulf %38, %39 : vector<8x8xf32>
      %41 = arith.truncf %40 : vector<8x8xf32> to vector<8x8xbf16>
      %c0_36 = arith.constant 0 : index
      %c0_37 = arith.constant 0 : index
      %c0_38 = arith.constant 0 : index
      %c0_39 = arith.constant 0 : index
      %42 = vector.load %arg7[%c0_36, %c0_37, %c0_38, %c0_39] : memref<1x1x8x8xbf16, #tpu.memory_space<vmem>>, vector<1x1x8x8xbf16>
      %43 = vector.shape_cast %42 : vector<1x1x8x8xbf16> to vector<8x8xbf16>
      %44 = vector.shape_cast %41 : vector<8x8xbf16> to vector<1x1x8x8xbf16>
      tpu.vector_store %arg7[%c0_36, %c0_37, %c0_38, %c0_39], %44 {strides = array<i32>} : memref<1x1x8x8xbf16, #tpu.memory_space<vmem>>, vector<1x1x8x8xbf16>,
    } else {
    }
    return
  }
  func.func @transform_0(%arg0: i32, %arg1: i32, %arg2: i32, %arg3: i32) -> (i32, i32, i32, i32, i32) {
    %c0_i32 = arith.constant 0 : i32
    %c0_i32_0 = arith.constant 0 : i32
    %c0_i32_1 = arith.constant 0 : i32
    return %c0_i32, %arg1, %arg0, %arg2, %c0_i32_0 : i32, i32, i32, i32, i32
  }
  func.func @transform_1(%arg0: i32, %arg1: i32, %arg2: i32, %arg3: i32) -> (i32, i32, i32, i32, i32) {
    %c1_i32 = arith.constant 1 : i32
    %c0_i32 = arith.constant 0 : i32
    %c0_i32_0 = arith.constant 0 : i32
    return %c1_i32, %arg1, %arg0, %arg3, %c0_i32 : i32, i32, i32, i32, i32
  }
  func.func @transform_2(%arg0: i32, %arg1: i32, %arg2: i32, %arg3: i32) -> (i32, i32, i32, i32, i32) {
    %c2_i32 = arith.constant 2 : i32
    %c0_i32 = arith.constant 0 : i32
    %c0_i32_0 = arith.constant 0 : i32
    return %c2_i32, %arg1, %arg0, %arg3, %c0_i32 : i32, i32, i32, i32, i32
  }
  func.func @transform_3(%arg0: i32, %arg1: i32, %arg2: i32, %arg3: i32) -> (i32, i32, i32, i32) {
    %c0_i32 = arith.constant 0 : i32
    %c0_i32_0 = arith.constant 0 : i32
    return %arg1, %arg0, %arg2, %c0_i32 : i32, i32, i32, i32
  }
}

module attributes {stable_mosaic.version = 11 : i64} {
  func.func @_o_projection_kernel(%arg0: i32, %arg1: i32, %arg2: memref<4x16x8xbf16, #tpu.memory_space<vmem>>, %arg3: memref<4x8x32xbf16, #tpu.memory_space<vmem>>, %arg4: memref<1x32xf32, #tpu.memory_space<vmem>>, %arg5: memref<16x32xf32, #tpu.memory_space<vmem>>, %arg6: memref<16x32xf32, #tpu.memory_space<vmem>>) attributes {dimension_semantics = [#tpu.dimension_semantics<parallel>, #tpu.dimension_semantics<parallel>], iteration_bounds = array<i64: 1, 1>, scalar_prefetch = 0 : i64, scratch_operands = 1 : i64, tpu.core_type = #tpu.core_type<tc>, window_params = [{transform_indices = @transform_0, window_bounds = array<i64: 4, 16, 8>}, {transform_indices = @transform_1, window_bounds = array<i64: 4, 8, 32>}, {transform_indices = @transform_2, window_bounds = array<i64: 1, 32>}, {transform_indices = @transform_3, window_bounds = array<i64: 16, 32>}]} {
    %cst = arith.constant 0.000000e+00 : f32
    %0 = vector.broadcast %cst : f32 to vector<16x32xf32>
    %c0 = arith.constant 0 : index
    %c0_0 = arith.constant 0 : index
    %1 = vector.load %arg6[%c0, %c0_0] : memref<16x32xf32, #tpu.memory_space<vmem>>, vector<16x32xf32>
    tpu.vector_store %arg6[%c0, %c0_0], %0 {strides = array<i32>} : memref<16x32xf32, #tpu.memory_space<vmem>>, vector<16x32xf32>,
    %c0_1 = arith.constant 0 : index
    %c0_2 = arith.constant 0 : index
    %2 = vector.load %arg6[%c0_1, %c0_2] : memref<16x32xf32, #tpu.memory_space<vmem>>, vector<16x32xf32>
    %c0_3 = arith.constant 0 : index
    %c0_4 = arith.constant 0 : index
    %c0_5 = arith.constant 0 : index
    %3 = vector.load %arg2[%c0_3, %c0_4, %c0_5] : memref<4x16x8xbf16, #tpu.memory_space<vmem>>, vector<1x16x8xbf16>
    %4 = vector.shape_cast %3 : vector<1x16x8xbf16> to vector<16x8xbf16>
    %c0_6 = arith.constant 0 : index
    %c0_7 = arith.constant 0 : index
    %c0_8 = arith.constant 0 : index
    %5 = vector.load %arg3[%c0_6, %c0_7, %c0_8] : memref<4x8x32xbf16, #tpu.memory_space<vmem>>, vector<1x8x32xbf16>
    %6 = vector.shape_cast %5 : vector<1x8x32xbf16> to vector<8x32xbf16>
    %cst_9 = arith.constant dense<0.000000e+00> : vector<16x32xf32>
    %7 = tpu.matmul %4, %6, %cst_9 {dimension_numbers = #tpu.dot_dimension_numbers<[1], [0], [0], [1], [0, 0, 1, 1], [], []>} : vector<16x8xbf16>, vector<8x32xbf16>, vector<16x32xf32> -> vector<16x32xf32>
    %8 = arith.addf %2, %7 : vector<16x32xf32>
    %c0_10 = arith.constant 0 : index
    %c0_11 = arith.constant 0 : index
    %9 = vector.load %arg6[%c0_10, %c0_11] : memref<16x32xf32, #tpu.memory_space<vmem>>, vector<16x32xf32>
    tpu.vector_store %arg6[%c0_10, %c0_11], %8 {strides = array<i32>} : memref<16x32xf32, #tpu.memory_space<vmem>>, vector<16x32xf32>,
    %c0_12 = arith.constant 0 : index
    %c0_13 = arith.constant 0 : index
    %10 = vector.load %arg6[%c0_12, %c0_13] : memref<16x32xf32, #tpu.memory_space<vmem>>, vector<16x32xf32>
    %c1 = arith.constant 1 : index
    %c0_14 = arith.constant 0 : index
    %c0_15 = arith.constant 0 : index
    %11 = vector.load %arg2[%c1, %c0_14, %c0_15] : memref<4x16x8xbf16, #tpu.memory_space<vmem>>, vector<1x16x8xbf16>
    %12 = vector.shape_cast %11 : vector<1x16x8xbf16> to vector<16x8xbf16>
    %c1_16 = arith.constant 1 : index
    %c0_17 = arith.constant 0 : index
    %c0_18 = arith.constant 0 : index
    %13 = vector.load %arg3[%c1_16, %c0_17, %c0_18] : memref<4x8x32xbf16, #tpu.memory_space<vmem>>, vector<1x8x32xbf16>
    %14 = vector.shape_cast %13 : vector<1x8x32xbf16> to vector<8x32xbf16>
    %cst_19 = arith.constant dense<0.000000e+00> : vector<16x32xf32>
    %15 = tpu.matmul %12, %14, %cst_19 {dimension_numbers = #tpu.dot_dimension_numbers<[1], [0], [0], [1], [0, 0, 1, 1], [], []>} : vector<16x8xbf16>, vector<8x32xbf16>, vector<16x32xf32> -> vector<16x32xf32>
    %16 = arith.addf %10, %15 : vector<16x32xf32>
    %c0_20 = arith.constant 0 : index
    %c0_21 = arith.constant 0 : index
    %17 = vector.load %arg6[%c0_20, %c0_21] : memref<16x32xf32, #tpu.memory_space<vmem>>, vector<16x32xf32>
    tpu.vector_store %arg6[%c0_20, %c0_21], %16 {strides = array<i32>} : memref<16x32xf32, #tpu.memory_space<vmem>>, vector<16x32xf32>,
    %c0_22 = arith.constant 0 : index
    %c0_23 = arith.constant 0 : index
    %18 = vector.load %arg6[%c0_22, %c0_23] : memref<16x32xf32, #tpu.memory_space<vmem>>, vector<16x32xf32>
    %c2 = arith.constant 2 : index
    %c0_24 = arith.constant 0 : index
    %c0_25 = arith.constant 0 : index
    %19 = vector.load %arg2[%c2, %c0_24, %c0_25] : memref<4x16x8xbf16, #tpu.memory_space<vmem>>, vector<1x16x8xbf16>
    %20 = vector.shape_cast %19 : vector<1x16x8xbf16> to vector<16x8xbf16>
    %c2_26 = arith.constant 2 : index
    %c0_27 = arith.constant 0 : index
    %c0_28 = arith.constant 0 : index
    %21 = vector.load %arg3[%c2_26, %c0_27, %c0_28] : memref<4x8x32xbf16, #tpu.memory_space<vmem>>, vector<1x8x32xbf16>
    %22 = vector.shape_cast %21 : vector<1x8x32xbf16> to vector<8x32xbf16>
    %cst_29 = arith.constant dense<0.000000e+00> : vector<16x32xf32>
    %23 = tpu.matmul %20, %22, %cst_29 {dimension_numbers = #tpu.dot_dimension_numbers<[1], [0], [0], [1], [0, 0, 1, 1], [], []>} : vector<16x8xbf16>, vector<8x32xbf16>, vector<16x32xf32> -> vector<16x32xf32>
    %24 = arith.addf %18, %23 : vector<16x32xf32>
    %c0_30 = arith.constant 0 : index
    %c0_31 = arith.constant 0 : index
    %25 = vector.load %arg6[%c0_30, %c0_31] : memref<16x32xf32, #tpu.memory_space<vmem>>, vector<16x32xf32>
    tpu.vector_store %arg6[%c0_30, %c0_31], %24 {strides = array<i32>} : memref<16x32xf32, #tpu.memory_space<vmem>>, vector<16x32xf32>,
    %c0_32 = arith.constant 0 : index
    %c0_33 = arith.constant 0 : index
    %26 = vector.load %arg6[%c0_32, %c0_33] : memref<16x32xf32, #tpu.memory_space<vmem>>, vector<16x32xf32>
    %c3 = arith.constant 3 : index
    %c0_34 = arith.constant 0 : index
    %c0_35 = arith.constant 0 : index
    %27 = vector.load %arg2[%c3, %c0_34, %c0_35] : memref<4x16x8xbf16, #tpu.memory_space<vmem>>, vector<1x16x8xbf16>
    %28 = vector.shape_cast %27 : vector<1x16x8xbf16> to vector<16x8xbf16>
    %c3_36 = arith.constant 3 : index
    %c0_37 = arith.constant 0 : index
    %c0_38 = arith.constant 0 : index
    %29 = vector.load %arg3[%c3_36, %c0_37, %c0_38] : memref<4x8x32xbf16, #tpu.memory_space<vmem>>, vector<1x8x32xbf16>
    %30 = vector.shape_cast %29 : vector<1x8x32xbf16> to vector<8x32xbf16>
    %cst_39 = arith.constant dense<0.000000e+00> : vector<16x32xf32>
    %31 = tpu.matmul %28, %30, %cst_39 {dimension_numbers = #tpu.dot_dimension_numbers<[1], [0], [0], [1], [0, 0, 1, 1], [], []>} : vector<16x8xbf16>, vector<8x32xbf16>, vector<16x32xf32> -> vector<16x32xf32>
    %32 = arith.addf %26, %31 : vector<16x32xf32>
    %c0_40 = arith.constant 0 : index
    %c0_41 = arith.constant 0 : index
    %33 = vector.load %arg6[%c0_40, %c0_41] : memref<16x32xf32, #tpu.memory_space<vmem>>, vector<16x32xf32>
    tpu.vector_store %arg6[%c0_40, %c0_41], %32 {strides = array<i32>} : memref<16x32xf32, #tpu.memory_space<vmem>>, vector<16x32xf32>,
    %c0_42 = arith.constant 0 : index
    %c0_43 = arith.constant 0 : index
    %34 = vector.load %arg6[%c0_42, %c0_43] : memref<16x32xf32, #tpu.memory_space<vmem>>, vector<16x32xf32>
    %c0_44 = arith.constant 0 : index
    %c0_45 = arith.constant 0 : index
    %35 = vector.load %arg4[%c0_44, %c0_45] : memref<1x32xf32, #tpu.memory_space<vmem>>, vector<1x32xf32>
    %36 = vector.broadcast %35 : vector<1x32xf32> to vector<16x32xf32>
    %37 = arith.addf %34, %36 : vector<16x32xf32>
    %c0_46 = arith.constant 0 : index
    %c0_47 = arith.constant 0 : index
    %38 = vector.load %arg5[%c0_46, %c0_47] : memref<16x32xf32, #tpu.memory_space<vmem>>, vector<16x32xf32>
    tpu.vector_store %arg5[%c0_46, %c0_47], %37 {strides = array<i32>} : memref<16x32xf32, #tpu.memory_space<vmem>>, vector<16x32xf32>,
    return
  }
  func.func @transform_0(%arg0: i32, %arg1: i32) -> (i32, i32, i32) {
    %c0_i32 = arith.constant 0 : i32
    %c0_i32_0 = arith.constant 0 : i32
    %c0_i32_1 = arith.constant 0 : i32
    return %c0_i32, %arg0, %c0_i32_0 : i32, i32, i32
  }
  func.func @transform_1(%arg0: i32, %arg1: i32) -> (i32, i32, i32) {
    %c0_i32 = arith.constant 0 : i32
    %c0_i32_0 = arith.constant 0 : i32
    %c0_i32_1 = arith.constant 0 : i32
    return %c0_i32, %c0_i32_0, %arg1 : i32, i32, i32
  }
  func.func @transform_2(%arg0: i32, %arg1: i32) -> (i32, i32) {
    %c0_i32 = arith.constant 0 : i32
    %c0_i32_0 = arith.constant 0 : i32
    return %c0_i32, %arg1 : i32, i32
  }
  func.func @transform_3(%arg0: i32, %arg1: i32) -> (i32, i32) {
    %c0_i32 = arith.constant 0 : i32
    return %arg0, %arg1 : i32, i32
  }
}

module attributes {stable_mosaic.version = 11 : i64} {
  func.func @_qkv_projection_kernel(%arg0: i32, %arg1: i32, %arg2: memref<16x32xbf16, #tpu.memory_space<vmem>>, %arg3: memref<12x32x8xbf16, #tpu.memory_space<vmem>>, %arg4: memref<12x1x8xf32, #tpu.memory_space<vmem>>, %arg5: memref<12x16x8xbf16, #tpu.memory_space<vmem>>, %arg6: memref<12x16x8xf32, #tpu.memory_space<vmem>>) attributes {dimension_semantics = [#tpu.dimension_semantics<parallel>, #tpu.dimension_semantics<arbitrary>], iteration_bounds = array<i64: 1, 1>, scalar_prefetch = 0 : i64, scratch_operands = 1 : i64, tpu.core_type = #tpu.core_type<tc>, window_params = [{transform_indices = @transform_0, window_bounds = array<i64: 16, 32>}, {transform_indices = @transform_1, window_bounds = array<i64: 12, 32, 8>}, {pipeline_mode = #tpu.pipeline_mode<synchronous>, transform_indices = @transform_2, window_bounds = array<i64: 12, 1, 8>}, {transform_indices = @transform_3, window_bounds = array<i64: 12, 16, 8>}]} {
    %c0_i32 = arith.constant 0 : i32
    %0 = arith.cmpi eq, %arg1, %c0_i32 : i32
    %1 = arith.extui %0 : i1 to i32
    %c0_i32_0 = arith.constant 0 : i32
    %2 = arith.cmpi ne, %1, %c0_i32_0 : i32
    scf.if %2 {
      %cst_112 = arith.constant 0.000000e+00 : f32
      %115 = vector.broadcast %cst_112 : f32 to vector<12x16x8xf32>
      %c0_113 = arith.constant 0 : index
      %c0_114 = arith.constant 0 : index
      %c0_115 = arith.constant 0 : index
      %116 = vector.load %arg6[%c0_113, %c0_114, %c0_115] : memref<12x16x8xf32, #tpu.memory_space<vmem>>, vector<12x16x8xf32>
      tpu.vector_store %arg6[%c0_113, %c0_114, %c0_115], %115 {strides = array<i32>} : memref<12x16x8xf32, #tpu.memory_space<vmem>>, vector<12x16x8xf32>,
    } else {
    }
    %c0 = arith.constant 0 : index
    %c0_1 = arith.constant 0 : index
    %3 = vector.load %arg2[%c0, %c0_1] : memref<16x32xbf16, #tpu.memory_space<vmem>>, vector<16x32xbf16>
    %c0_2 = arith.constant 0 : index
    %c0_3 = arith.constant 0 : index
    %c0_4 = arith.constant 0 : index
    %4 = vector.load %arg6[%c0_2, %c0_3, %c0_4] : memref<12x16x8xf32, #tpu.memory_space<vmem>>, vector<1x16x8xf32>
    %5 = vector.shape_cast %4 : vector<1x16x8xf32> to vector<16x8xf32>
    %c0_5 = arith.constant 0 : index
    %c0_6 = arith.constant 0 : index
    %c0_7 = arith.constant 0 : index
    %6 = vector.load %arg3[%c0_5, %c0_6, %c0_7] : memref<12x32x8xbf16, #tpu.memory_space<vmem>>, vector<1x32x8xbf16>
    %7 = vector.shape_cast %6 : vector<1x32x8xbf16> to vector<32x8xbf16>
    %cst = arith.constant dense<0.000000e+00> : vector<16x8xf32>
    %8 = tpu.matmul %3, %7, %cst {dimension_numbers = #tpu.dot_dimension_numbers<[1], [0], [0], [1], [0, 0, 1, 1], [], []>} : vector<16x32xbf16>, vector<32x8xbf16>, vector<16x8xf32> -> vector<16x8xf32>
    %9 = arith.addf %5, %8 : vector<16x8xf32>
    %c0_8 = arith.constant 0 : index
    %c0_9 = arith.constant 0 : index
    %c0_10 = arith.constant 0 : index
    %10 = vector.load %arg6[%c0_8, %c0_9, %c0_10] : memref<12x16x8xf32, #tpu.memory_space<vmem>>, vector<1x16x8xf32>
    %11 = vector.shape_cast %10 : vector<1x16x8xf32> to vector<16x8xf32>
    %12 = vector.shape_cast %9 : vector<16x8xf32> to vector<1x16x8xf32>
    tpu.vector_store %arg6[%c0_8, %c0_9, %c0_10], %12 {strides = array<i32>} : memref<12x16x8xf32, #tpu.memory_space<vmem>>, vector<1x16x8xf32>,
    %c1 = arith.constant 1 : index
    %c0_11 = arith.constant 0 : index
    %c0_12 = arith.constant 0 : index
    %13 = vector.load %arg6[%c1, %c0_11, %c0_12] : memref<12x16x8xf32, #tpu.memory_space<vmem>>, vector<1x16x8xf32>
    %14 = vector.shape_cast %13 : vector<1x16x8xf32> to vector<16x8xf32>
    %c1_13 = arith.constant 1 : index
    %c0_14 = arith.constant 0 : index
    %c0_15 = arith.constant 0 : index
    %15 = vector.load %arg3[%c1_13, %c0_14, %c0_15] : memref<12x32x8xbf16, #tpu.memory_space<vmem>>, vector<1x32x8xbf16>
    %16 = vector.shape_cast %15 : vector<1x32x8xbf16> to vector<32x8xbf16>
    %cst_16 = arith.constant dense<0.000000e+00> : vector<16x8xf32>
    %17 = tpu.matmul %3, %16, %cst_16 {dimension_numbers = #tpu.dot_dimension_numbers<[1], [0], [0], [1], [0, 0, 1, 1], [], []>} : vector<16x32xbf16>, vector<32x8xbf16>, vector<16x8xf32> -> vector<16x8xf32>
    %18 = arith.addf %14, %17 : vector<16x8xf32>
    %c1_17 = arith.constant 1 : index
    %c0_18 = arith.constant 0 : index
    %c0_19 = arith.constant 0 : index
    %19 = vector.load %arg6[%c1_17, %c0_18, %c0_19] : memref<12x16x8xf32, #tpu.memory_space<vmem>>, vector<1x16x8xf32>
    %20 = vector.shape_cast %19 : vector<1x16x8xf32> to vector<16x8xf32>
    %21 = vector.shape_cast %18 : vector<16x8xf32> to vector<1x16x8xf32>
    tpu.vector_store %arg6[%c1_17, %c0_18, %c0_19], %21 {strides = array<i32>} : memref<12x16x8xf32, #tpu.memory_space<vmem>>, vector<1x16x8xf32>,
    %c2 = arith.constant 2 : index
    %c0_20 = arith.constant 0 : index
    %c0_21 = arith.constant 0 : index
    %22 = vector.load %arg6[%c2, %c0_20, %c0_21] : memref<12x16x8xf32, #tpu.memory_space<vmem>>, vector<1x16x8xf32>
    %23 = vector.shape_cast %22 : vector<1x16x8xf32> to vector<16x8xf32>
    %c2_22 = arith.constant 2 : index
    %c0_23 = arith.constant 0 : index
    %c0_24 = arith.constant 0 : index
    %24 = vector.load %arg3[%c2_22, %c0_23, %c0_24] : memref<12x32x8xbf16, #tpu.memory_space<vmem>>, vector<1x32x8xbf16>
    %25 = vector.shape_cast %24 : vector<1x32x8xbf16> to vector<32x8xbf16>
    %cst_25 = arith.constant dense<0.000000e+00> : vector<16x8xf32>
    %26 = tpu.matmul %3, %25, %cst_25 {dimension_numbers = #tpu.dot_dimension_numbers<[1], [0], [0], [1], [0, 0, 1, 1], [], []>} : vector<16x32xbf16>, vector<32x8xbf16>, vector<16x8xf32> -> vector<16x8xf32>
    %27 = arith.addf %23, %26 : vector<16x8xf32>
    %c2_26 = arith.constant 2 : index
    %c0_27 = arith.constant 0 : index
    %c0_28 = arith.constant 0 : index
    %28 = vector.load %arg6[%c2_26, %c0_27, %c0_28] : memref<12x16x8xf32, #tpu.memory_space<vmem>>, vector<1x16x8xf32>
    %29 = vector.shape_cast %28 : vector<1x16x8xf32> to vector<16x8xf32>
    %30 = vector.shape_cast %27 : vector<16x8xf32> to vector<1x16x8xf32>
    tpu.vector_store %arg6[%c2_26, %c0_27, %c0_28], %30 {strides = array<i32>} : memref<12x16x8xf32, #tpu.memory_space<vmem>>, vector<1x16x8xf32>,
    %c3 = arith.constant 3 : index
    %c0_29 = arith.constant 0 : index
    %c0_30 = arith.constant 0 : index
    %31 = vector.load %arg6[%c3, %c0_29, %c0_30] : memref<12x16x8xf32, #tpu.memory_space<vmem>>, vector<1x16x8xf32>
    %32 = vector.shape_cast %31 : vector<1x16x8xf32> to vector<16x8xf32>
    %c3_31 = arith.constant 3 : index
    %c0_32 = arith.constant 0 : index
    %c0_33 = arith.constant 0 : index
    %33 = vector.load %arg3[%c3_31, %c0_32, %c0_33] : memref<12x32x8xbf16, #tpu.memory_space<vmem>>, vector<1x32x8xbf16>
    %34 = vector.shape_cast %33 : vector<1x32x8xbf16> to vector<32x8xbf16>
    %cst_34 = arith.constant dense<0.000000e+00> : vector<16x8xf32>
    %35 = tpu.matmul %3, %34, %cst_34 {dimension_numbers = #tpu.dot_dimension_numbers<[1], [0], [0], [1], [0, 0, 1, 1], [], []>} : vector<16x32xbf16>, vector<32x8xbf16>, vector<16x8xf32> -> vector<16x8xf32>
    %36 = arith.addf %32, %35 : vector<16x8xf32>
    %c3_35 = arith.constant 3 : index
    %c0_36 = arith.constant 0 : index
    %c0_37 = arith.constant 0 : index
    %37 = vector.load %arg6[%c3_35, %c0_36, %c0_37] : memref<12x16x8xf32, #tpu.memory_space<vmem>>, vector<1x16x8xf32>
    %38 = vector.shape_cast %37 : vector<1x16x8xf32> to vector<16x8xf32>
    %39 = vector.shape_cast %36 : vector<16x8xf32> to vector<1x16x8xf32>
    tpu.vector_store %arg6[%c3_35, %c0_36, %c0_37], %39 {strides = array<i32>} : memref<12x16x8xf32, #tpu.memory_space<vmem>>, vector<1x16x8xf32>,
    %c4 = arith.constant 4 : index
    %c0_38 = arith.constant 0 : index
    %c0_39 = arith.constant 0 : index
    %40 = vector.load %arg6[%c4, %c0_38, %c0_39] : memref<12x16x8xf32, #tpu.memory_space<vmem>>, vector<1x16x8xf32>
    %41 = vector.shape_cast %40 : vector<1x16x8xf32> to vector<16x8xf32>
    %c4_40 = arith.constant 4 : index
    %c0_41 = arith.constant 0 : index
    %c0_42 = arith.constant 0 : index
    %42 = vector.load %arg3[%c4_40, %c0_41, %c0_42] : memref<12x32x8xbf16, #tpu.memory_space<vmem>>, vector<1x32x8xbf16>
    %43 = vector.shape_cast %42 : vector<1x32x8xbf16> to vector<32x8xbf16>
    %cst_43 = arith.constant dense<0.000000e+00> : vector<16x8xf32>
    %44 = tpu.matmul %3, %43, %cst_43 {dimension_numbers = #tpu.dot_dimension_numbers<[1], [0], [0], [1], [0, 0, 1, 1], [], []>} : vector<16x32xbf16>, vector<32x8xbf16>, vector<16x8xf32> -> vector<16x8xf32>
    %45 = arith.addf %41, %44 : vector<16x8xf32>
    %c4_44 = arith.constant 4 : index
    %c0_45 = arith.constant 0 : index
    %c0_46 = arith.constant 0 : index
    %46 = vector.load %arg6[%c4_44, %c0_45, %c0_46] : memref<12x16x8xf32, #tpu.memory_space<vmem>>, vector<1x16x8xf32>
    %47 = vector.shape_cast %46 : vector<1x16x8xf32> to vector<16x8xf32>
    %48 = vector.shape_cast %45 : vector<16x8xf32> to vector<1x16x8xf32>
    tpu.vector_store %arg6[%c4_44, %c0_45, %c0_46], %48 {strides = array<i32>} : memref<12x16x8xf32, #tpu.memory_space<vmem>>, vector<1x16x8xf32>,
    %c5 = arith.constant 5 : index
    %c0_47 = arith.constant 0 : index
    %c0_48 = arith.constant 0 : index
    %49 = vector.load %arg6[%c5, %c0_47, %c0_48] : memref<12x16x8xf32, #tpu.memory_space<vmem>>, vector<1x16x8xf32>
    %50 = vector.shape_cast %49 : vector<1x16x8xf32> to vector<16x8xf32>
    %c5_49 = arith.constant 5 : index
    %c0_50 = arith.constant 0 : index
    %c0_51 = arith.constant 0 : index
    %51 = vector.load %arg3[%c5_49, %c0_50, %c0_51] : memref<12x32x8xbf16, #tpu.memory_space<vmem>>, vector<1x32x8xbf16>
    %52 = vector.shape_cast %51 : vector<1x32x8xbf16> to vector<32x8xbf16>
    %cst_52 = arith.constant dense<0.000000e+00> : vector<16x8xf32>
    %53 = tpu.matmul %3, %52, %cst_52 {dimension_numbers = #tpu.dot_dimension_numbers<[1], [0], [0], [1], [0, 0, 1, 1], [], []>} : vector<16x32xbf16>, vector<32x8xbf16>, vector<16x8xf32> -> vector<16x8xf32>
    %54 = arith.addf %50, %53 : vector<16x8xf32>
    %c5_53 = arith.constant 5 : index
    %c0_54 = arith.constant 0 : index
    %c0_55 = arith.constant 0 : index
    %55 = vector.load %arg6[%c5_53, %c0_54, %c0_55] : memref<12x16x8xf32, #tpu.memory_space<vmem>>, vector<1x16x8xf32>
    %56 = vector.shape_cast %55 : vector<1x16x8xf32> to vector<16x8xf32>
    %57 = vector.shape_cast %54 : vector<16x8xf32> to vector<1x16x8xf32>
    tpu.vector_store %arg6[%c5_53, %c0_54, %c0_55], %57 {strides = array<i32>} : memref<12x16x8xf32, #tpu.memory_space<vmem>>, vector<1x16x8xf32>,
    %c6 = arith.constant 6 : index
    %c0_56 = arith.constant 0 : index
    %c0_57 = arith.constant 0 : index
    %58 = vector.load %arg6[%c6, %c0_56, %c0_57] : memref<12x16x8xf32, #tpu.memory_space<vmem>>, vector<1x16x8xf32>
    %59 = vector.shape_cast %58 : vector<1x16x8xf32> to vector<16x8xf32>
    %c6_58 = arith.constant 6 : index
    %c0_59 = arith.constant 0 : index
    %c0_60 = arith.constant 0 : index
    %60 = vector.load %arg3[%c6_58, %c0_59, %c0_60] : memref<12x32x8xbf16, #tpu.memory_space<vmem>>, vector<1x32x8xbf16>
    %61 = vector.shape_cast %60 : vector<1x32x8xbf16> to vector<32x8xbf16>
    %cst_61 = arith.constant dense<0.000000e+00> : vector<16x8xf32>
    %62 = tpu.matmul %3, %61, %cst_61 {dimension_numbers = #tpu.dot_dimension_numbers<[1], [0], [0], [1], [0, 0, 1, 1], [], []>} : vector<16x32xbf16>, vector<32x8xbf16>, vector<16x8xf32> -> vector<16x8xf32>
    %63 = arith.addf %59, %62 : vector<16x8xf32>
    %c6_62 = arith.constant 6 : index
    %c0_63 = arith.constant 0 : index
    %c0_64 = arith.constant 0 : index
    %64 = vector.load %arg6[%c6_62, %c0_63, %c0_64] : memref<12x16x8xf32, #tpu.memory_space<vmem>>, vector<1x16x8xf32>
    %65 = vector.shape_cast %64 : vector<1x16x8xf32> to vector<16x8xf32>
    %66 = vector.shape_cast %63 : vector<16x8xf32> to vector<1x16x8xf32>
    tpu.vector_store %arg6[%c6_62, %c0_63, %c0_64], %66 {strides = array<i32>} : memref<12x16x8xf32, #tpu.memory_space<vmem>>, vector<1x16x8xf32>,
    %c7 = arith.constant 7 : index
    %c0_65 = arith.constant 0 : index
    %c0_66 = arith.constant 0 : index
    %67 = vector.load %arg6[%c7, %c0_65, %c0_66] : memref<12x16x8xf32, #tpu.memory_space<vmem>>, vector<1x16x8xf32>
    %68 = vector.shape_cast %67 : vector<1x16x8xf32> to vector<16x8xf32>
    %c7_67 = arith.constant 7 : index
    %c0_68 = arith.constant 0 : index
    %c0_69 = arith.constant 0 : index
    %69 = vector.load %arg3[%c7_67, %c0_68, %c0_69] : memref<12x32x8xbf16, #tpu.memory_space<vmem>>, vector<1x32x8xbf16>
    %70 = vector.shape_cast %69 : vector<1x32x8xbf16> to vector<32x8xbf16>
    %cst_70 = arith.constant dense<0.000000e+00> : vector<16x8xf32>
    %71 = tpu.matmul %3, %70, %cst_70 {dimension_numbers = #tpu.dot_dimension_numbers<[1], [0], [0], [1], [0, 0, 1, 1], [], []>} : vector<16x32xbf16>, vector<32x8xbf16>, vector<16x8xf32> -> vector<16x8xf32>
    %72 = arith.addf %68, %71 : vector<16x8xf32>
    %c7_71 = arith.constant 7 : index
    %c0_72 = arith.constant 0 : index
    %c0_73 = arith.constant 0 : index
    %73 = vector.load %arg6[%c7_71, %c0_72, %c0_73] : memref<12x16x8xf32, #tpu.memory_space<vmem>>, vector<1x16x8xf32>
    %74 = vector.shape_cast %73 : vector<1x16x8xf32> to vector<16x8xf32>
    %75 = vector.shape_cast %72 : vector<16x8xf32> to vector<1x16x8xf32>
    tpu.vector_store %arg6[%c7_71, %c0_72, %c0_73], %75 {strides = array<i32>} : memref<12x16x8xf32, #tpu.memory_space<vmem>>, vector<1x16x8xf32>,
    %c8 = arith.constant 8 : index
    %c0_74 = arith.constant 0 : index
    %c0_75 = arith.constant 0 : index
    %76 = vector.load %arg6[%c8, %c0_74, %c0_75] : memref<12x16x8xf32, #tpu.memory_space<vmem>>, vector<1x16x8xf32>
    %77 = vector.shape_cast %76 : vector<1x16x8xf32> to vector<16x8xf32>
    %c8_76 = arith.constant 8 : index
    %c0_77 = arith.constant 0 : index
    %c0_78 = arith.constant 0 : index
    %78 = vector.load %arg3[%c8_76, %c0_77, %c0_78] : memref<12x32x8xbf16, #tpu.memory_space<vmem>>, vector<1x32x8xbf16>
    %79 = vector.shape_cast %78 : vector<1x32x8xbf16> to vector<32x8xbf16>
    %cst_79 = arith.constant dense<0.000000e+00> : vector<16x8xf32>
    %80 = tpu.matmul %3, %79, %cst_79 {dimension_numbers = #tpu.dot_dimension_numbers<[1], [0], [0], [1], [0, 0, 1, 1], [], []>} : vector<16x32xbf16>, vector<32x8xbf16>, vector<16x8xf32> -> vector<16x8xf32>
    %81 = arith.addf %77, %80 : vector<16x8xf32>
    %c8_80 = arith.constant 8 : index
    %c0_81 = arith.constant 0 : index
    %c0_82 = arith.constant 0 : index
    %82 = vector.load %arg6[%c8_80, %c0_81, %c0_82] : memref<12x16x8xf32, #tpu.memory_space<vmem>>, vector<1x16x8xf32>
    %83 = vector.shape_cast %82 : vector<1x16x8xf32> to vector<16x8xf32>
    %84 = vector.shape_cast %81 : vector<16x8xf32> to vector<1x16x8xf32>
    tpu.vector_store %arg6[%c8_80, %c0_81, %c0_82], %84 {strides = array<i32>} : memref<12x16x8xf32, #tpu.memory_space<vmem>>, vector<1x16x8xf32>,
    %c9 = arith.constant 9 : index
    %c0_83 = arith.constant 0 : index
    %c0_84 = arith.constant 0 : index
    %85 = vector.load %arg6[%c9, %c0_83, %c0_84] : memref<12x16x8xf32, #tpu.memory_space<vmem>>, vector<1x16x8xf32>
    %86 = vector.shape_cast %85 : vector<1x16x8xf32> to vector<16x8xf32>
    %c9_85 = arith.constant 9 : index
    %c0_86 = arith.constant 0 : index
    %c0_87 = arith.constant 0 : index
    %87 = vector.load %arg3[%c9_85, %c0_86, %c0_87] : memref<12x32x8xbf16, #tpu.memory_space<vmem>>, vector<1x32x8xbf16>
    %88 = vector.shape_cast %87 : vector<1x32x8xbf16> to vector<32x8xbf16>
    %cst_88 = arith.constant dense<0.000000e+00> : vector<16x8xf32>
    %89 = tpu.matmul %3, %88, %cst_88 {dimension_numbers = #tpu.dot_dimension_numbers<[1], [0], [0], [1], [0, 0, 1, 1], [], []>} : vector<16x32xbf16>, vector<32x8xbf16>, vector<16x8xf32> -> vector<16x8xf32>
    %90 = arith.addf %86, %89 : vector<16x8xf32>
    %c9_89 = arith.constant 9 : index
    %c0_90 = arith.constant 0 : index
    %c0_91 = arith.constant 0 : index
    %91 = vector.load %arg6[%c9_89, %c0_90, %c0_91] : memref<12x16x8xf32, #tpu.memory_space<vmem>>, vector<1x16x8xf32>
    %92 = vector.shape_cast %91 : vector<1x16x8xf32> to vector<16x8xf32>
    %93 = vector.shape_cast %90 : vector<16x8xf32> to vector<1x16x8xf32>
    tpu.vector_store %arg6[%c9_89, %c0_90, %c0_91], %93 {strides = array<i32>} : memref<12x16x8xf32, #tpu.memory_space<vmem>>, vector<1x16x8xf32>,
    %c10 = arith.constant 10 : index
    %c0_92 = arith.constant 0 : index
    %c0_93 = arith.constant 0 : index
    %94 = vector.load %arg6[%c10, %c0_92, %c0_93] : memref<12x16x8xf32, #tpu.memory_space<vmem>>, vector<1x16x8xf32>
    %95 = vector.shape_cast %94 : vector<1x16x8xf32> to vector<16x8xf32>
    %c10_94 = arith.constant 10 : index
    %c0_95 = arith.constant 0 : index
    %c0_96 = arith.constant 0 : index
    %96 = vector.load %arg3[%c10_94, %c0_95, %c0_96] : memref<12x32x8xbf16, #tpu.memory_space<vmem>>, vector<1x32x8xbf16>
    %97 = vector.shape_cast %96 : vector<1x32x8xbf16> to vector<32x8xbf16>
    %cst_97 = arith.constant dense<0.000000e+00> : vector<16x8xf32>
    %98 = tpu.matmul %3, %97, %cst_97 {dimension_numbers = #tpu.dot_dimension_numbers<[1], [0], [0], [1], [0, 0, 1, 1], [], []>} : vector<16x32xbf16>, vector<32x8xbf16>, vector<16x8xf32> -> vector<16x8xf32>
    %99 = arith.addf %95, %98 : vector<16x8xf32>
    %c10_98 = arith.constant 10 : index
    %c0_99 = arith.constant 0 : index
    %c0_100 = arith.constant 0 : index
    %100 = vector.load %arg6[%c10_98, %c0_99, %c0_100] : memref<12x16x8xf32, #tpu.memory_space<vmem>>, vector<1x16x8xf32>
    %101 = vector.shape_cast %100 : vector<1x16x8xf32> to vector<16x8xf32>
    %102 = vector.shape_cast %99 : vector<16x8xf32> to vector<1x16x8xf32>
    tpu.vector_store %arg6[%c10_98, %c0_99, %c0_100], %102 {strides = array<i32>} : memref<12x16x8xf32, #tpu.memory_space<vmem>>, vector<1x16x8xf32>,
    %c11 = arith.constant 11 : index
    %c0_101 = arith.constant 0 : index
    %c0_102 = arith.constant 0 : index
    %103 = vector.load %arg6[%c11, %c0_101, %c0_102] : memref<12x16x8xf32, #tpu.memory_space<vmem>>, vector<1x16x8xf32>
    %104 = vector.shape_cast %103 : vector<1x16x8xf32> to vector<16x8xf32>
    %c11_103 = arith.constant 11 : index
    %c0_104 = arith.constant 0 : index
    %c0_105 = arith.constant 0 : index
    %105 = vector.load %arg3[%c11_103, %c0_104, %c0_105] : memref<12x32x8xbf16, #tpu.memory_space<vmem>>, vector<1x32x8xbf16>
    %106 = vector.shape_cast %105 : vector<1x32x8xbf16> to vector<32x8xbf16>
    %cst_106 = arith.constant dense<0.000000e+00> : vector<16x8xf32>
    %107 = tpu.matmul %3, %106, %cst_106 {dimension_numbers = #tpu.dot_dimension_numbers<[1], [0], [0], [1], [0, 0, 1, 1], [], []>} : vector<16x32xbf16>, vector<32x8xbf16>, vector<16x8xf32> -> vector<16x8xf32>
    %108 = arith.addf %104, %107 : vector<16x8xf32>
    %c11_107 = arith.constant 11 : index
    %c0_108 = arith.constant 0 : index
    %c0_109 = arith.constant 0 : index
    %109 = vector.load %arg6[%c11_107, %c0_108, %c0_109] : memref<12x16x8xf32, #tpu.memory_space<vmem>>, vector<1x16x8xf32>
    %110 = vector.shape_cast %109 : vector<1x16x8xf32> to vector<16x8xf32>
    %111 = vector.shape_cast %108 : vector<16x8xf32> to vector<1x16x8xf32>
    tpu.vector_store %arg6[%c11_107, %c0_108, %c0_109], %111 {strides = array<i32>} : memref<12x16x8xf32, #tpu.memory_space<vmem>>, vector<1x16x8xf32>,
    %c0_i32_110 = arith.constant 0 : i32
    %112 = arith.cmpi eq, %arg1, %c0_i32_110 : i32
    %113 = arith.extui %112 : i1 to i32
    %c0_i32_111 = arith.constant 0 : i32
    %114 = arith.cmpi ne, %113, %c0_i32_111 : i32
    scf.if %114 {
      %c0_112 = arith.constant 0 : index
      %c0_113 = arith.constant 0 : index
      %c0_114 = arith.constant 0 : index
      %115 = vector.load %arg6[%c0_112, %c0_113, %c0_114] : memref<12x16x8xf32, #tpu.memory_space<vmem>>, vector<12x16x8xf32>
      %c0_115 = arith.constant 0 : index
      %c0_116 = arith.constant 0 : index
      %c0_117 = arith.constant 0 : index
      %116 = vector.load %arg4[%c0_115, %c0_116, %c0_117] : memref<12x1x8xf32, #tpu.memory_space<vmem>>, vector<12x1x8xf32>
      %117 = vector.broadcast %116 : vector<12x1x8xf32> to vector<12x16x8xf32>
      %118 = arith.addf %115, %117 : vector<12x16x8xf32>
      %119 = arith.truncf %118 : vector<12x16x8xf32> to vector<12x16x8xbf16>
      %c0_118 = arith.constant 0 : index
      %c0_119 = arith.constant 0 : index
      %c0_120 = arith.constant 0 : index
      %120 = vector.load %arg5[%c0_118, %c0_119, %c0_120] : memref<12x16x8xbf16, #tpu.memory_space<vmem>>, vector<12x16x8xbf16>
      tpu.vector_store %arg5[%c0_118, %c0_119, %c0_120], %119 {strides = array<i32>} : memref<12x16x8xbf16, #tpu.memory_space<vmem>>, vector<12x16x8xbf16>,
    } else {
    }
    return
  }
  func.func @transform_0(%arg0: i32, %arg1: i32) -> (i32, i32) {
    %c0_i32 = arith.constant 0 : i32
    return %arg0, %arg1 : i32, i32
  }
  func.func @transform_1(%arg0: i32, %arg1: i32) -> (i32, i32, i32) {
    %c0_i32 = arith.constant 0 : i32
    %c0_i32_0 = arith.constant 0 : i32
    %c0_i32_1 = arith.constant 0 : i32
    return %c0_i32, %arg1, %c0_i32_0 : i32, i32, i32
  }
  func.func @transform_2(%arg0: i32, %arg1: i32) -> (i32, i32, i32) {
    %c0_i32 = arith.constant 0 : i32
    %c0_i32_0 = arith.constant 0 : i32
    %c0_i32_1 = arith.constant 0 : i32
    %c0_i32_2 = arith.constant 0 : i32
    return %c0_i32, %c0_i32_0, %c0_i32_1 : i32, i32, i32
  }
  func.func @transform_3(%arg0: i32, %arg1: i32) -> (i32, i32, i32) {
    %c0_i32 = arith.constant 0 : i32
    %c0_i32_0 = arith.constant 0 : i32
    %c0_i32_1 = arith.constant 0 : i32
    return %c0_i32, %arg0, %c0_i32_0 : i32, i32, i32
  }
}

</mosaic_0001>

<bundles_post_ra>
// kernel: attention_forward.5
= control target key start
LH: loop header
LB: loop body
LE: loop exit
PB: predicated region body
PF: predicated region fallthrough
CT: control target
= control target key end

     0   :  { %vm33_vm0 = vcmask 1043456   ;;  %vm29_vm1 = vcmask 64512   ;;  %vm16_vm2 = vcmask 261120   ;;  %s329_s0 = inlined_call_operand.vmem [shape: bf16[4,16,8], index: 0, kind: input, shape index: {}]   ;;  %s330_s1 = inlined_call_operand.vmem [shape: bf16[4,8,32], index: 1, kind: input, shape index: {}]   ;;  %s331_s2 = inlined_call_operand.vmem [shape: f32[1,32], index: 2, kind: input, shape index: {}]   ;;  %s332_s3 = inlined_call_operand.hbm [shape: f32[16,32], index: 3, kind: output, shape index: {}]  }
   0x1   :  { %v23_v0 = vld [vmem:[%s330_s1] sm:$0xf]  ;;  %v198_v1 = vld [vmem:[%s330_s1 + $0x4] sm:$0xf]  ;;  %v221_v5 = vld [vmem:[%s329_s0 + $0x8] sm:$0xff] }
   0x2   :  { %v220_v2 = vld [vmem:[%s329_s0] sm:$0xff]  ;;  %v35_v3 = vsel %vm33_vm0, %v23_v0, 0  ;;  %v71_v4 = vsel %vm33_vm0, %v198_v1, 0  ;;  %v206_v6 = vld [vmem:[%s330_s1 + $0x8] sm:$0xf]  ;;  %v222_v8 = vld [vmem:[%s329_s0 + $0x10] sm:$0xff] }
   0x3   :  { %44 = vmatpush.bf16.msra.mxu0 %v35_v3  ;;  %80 = vmatpush.bf16.msra.mxu1 %v71_v4  ;;  %v107_v7 = vsel %vm33_vm0, %v206_v6, 0  ;;  %v214_v9 = vld [vmem:[%s330_s1 + $0xc] sm:$0xf]  ;;  %v223_v10 = vld [vmem:[%s329_s0 + $0x18] sm:$0xff] }
   0x4   :  { %116 = vmatpush.bf16.msra.mxu2 %v107_v7  ;;  %v143_v11 = vsel %vm33_vm0, %v214_v9, 0 }
   0x5   :  { %8 = vsyncpa [#allocation4], 0  ;;  %152 = vmatpush.bf16.msra.mxu3 %v143_v11  ;;  %v255_v12 = vmov 0.0   ;;  %v228_v34 = vld [vmem:[%s331_s2] ss:$0 sm:$0xff]  ;;  %s256_s28 = smov [#allocation3]  }
   0x6   :  { %17 = vst.msk [vmem:[#allocation2] sm:$0xff] %vm16_vm2, %v255_v12  ;;  %195 = vmatmul.msk.bf16.vlgmr.msra.gmra.mxu0 %vm29_vm1, %v220_v2  ;;  %203 = vmatmul.msk.bf16.vlgmr.msra.gmra.mxu1 %vm29_vm1, %v221_v5  ;;  %s177_s29 = sshll.u32 %s256_s28, 4  ;;  %s179_s5 = sshll.u32 %s332_s3, 4  ;;  %s178_s29 = int_to_ptr.vmem [resolvable:$true] %s177_s29  ;;  %s180_s5 = int_to_ptr.hbm [resolvable:$true] %s179_s5 }
   0x7   :  { %18 = vst.msk [vmem:[#allocation2 + $0x8] sm:$0xff] %vm16_vm2, %v255_v12  ;;  %211 = vmatmul.msk.bf16.vlgmr.msra.gmra.mxu2 %vm29_vm1, %v222_v8  ;;  %s257_s2 = smov 128   ;;  %s258_s6 = smov 8  }
   0x8   :  { %219 = vmatmul.msk.bf16.vlgmr.msra.gmra.mxu3 %vm29_vm1, %v223_v10 }
   0xd   :  { %v19_v13 = vld [vmem:[#allocation2] sm:$0xff] }
   0xe   :  { %v20_v16 = vld [vmem:[#allocation2 + $0x8] sm:$0xff] }
  0x83   :  { %v46_v14 = vpop.f32.mrf.mxu0  ;;  %v82_v17 = vpop.f32.mrf.mxu1 }
  0x84   :  { %v51_v15 = vadd.f32 %v46_v14, %v19_v13 }
  0x86   :  { %53 = vst.msk [vmem:[#allocation2] sm:$0xff] %vm16_vm2, %v51_v15 }
  0x8a   :  { %v118_v24 = vpop.f32.mrf.mxu2 }
  0x8b   :  { %v48_v18 = vpop.f32.mrf.mxu0  ;;  %v84_v23 = vpop.f32.mrf.mxu1 }
  0x8c   :  { %v52_v19 = vadd.f32 %v48_v18, %v20_v16  ;;  %v154_v30 = vpop.f32.mrf.mxu3 }
  0x8d   :  { %v55_v20 = vld [vmem:[#allocation2] sm:$0xff] }
  0x8e   :  { %v87_v21 = vadd.f32 %v82_v17, %v55_v20  ;;  %54 = vst.msk [vmem:[#allocation2 + $0x8] sm:$0xff] %vm16_vm2, %v52_v19 }
  0x90   :  { %89 = vst.msk [vmem:[#allocation2] sm:$0xff] %vm16_vm2, %v87_v21 }
  0x92   :  { %v120_v29 = vpop.f32.mrf.mxu2 }
  0x94   :  { %v156_v36 = vpop.f32.mrf.mxu3 }
  0x95   :  { %v56_v22 = vld [vmem:[#allocation2 + $0x8] sm:$0xff] }
  0x96   :  { %v88_v25 = vadd.f32 %v84_v23, %v56_v22 }
  0x97   :  { %v91_v26 = vld [vmem:[#allocation2] sm:$0xff] }
  0x98   :  { %90 = vst.msk [vmem:[#allocation2 + $0x8] sm:$0xff] %vm16_vm2, %v88_v25  ;;  %v123_v27 = vadd.f32 %v118_v24, %v91_v26 }
  0x9a   :  { %125 = vst.msk [vmem:[#allocation2] sm:$0xff] %vm16_vm2, %v123_v27 }
  0x9f   :  { %v92_v28 = vld [vmem:[#allocation2 + $0x8] sm:$0xff] }
  0xa0   :  { %v124_v31 = vadd.f32 %v120_v29, %v92_v28 }
  0xa1   :  { %v127_v32 = vld [vmem:[#allocation2] sm:$0xff] }
  0xa2   :  { %126 = vst.msk [vmem:[#allocation2 + $0x8] sm:$0xff] %vm16_vm2, %v124_v31  ;;  %v159_v33 = vadd.f32 %v154_v30, %v127_v32 }
  0xa4   :  { %161 = vst.msk [vmem:[#allocation2] sm:$0xff] %vm16_vm2, %v159_v33 }
  0xa9   :  { %v128_v35 = vld [vmem:[#allocation2 + $0x8] sm:$0xff] }
  0xaa   :  { %v160_v37 = vadd.f32 %v156_v36, %v128_v35 }
  0xab   :  { %v163_v38 = vld [vmem:[#allocation2] sm:$0xff] }
  0xac   :  { %162 = vst.msk [vmem:[#allocation2 + $0x8] sm:$0xff] %vm16_vm2, %v160_v37  ;;  %v169_v39 = vadd.f32 %v228_v34, %v163_v38 }
  0xae   :  { %171 = vst.msk [vmem:[#allocation3] sm:$0xff] %vm16_vm2, %v169_v39 }
  0xb3   :  { %v164_v40 = vld [vmem:[#allocation2 + $0x8] sm:$0xff] }
  0xb4   :  { %v170_v41 = vadd.f32 %v228_v34, %v164_v40 }
  0xb6   :  { %172 = vst.msk [vmem:[#allocation3 + $0x8] sm:$0xff] %vm16_vm2, %v170_v41 }
  0xb7   :  { %185 = dma.vmem_to_hbm [thread:$0]  %s178_s29, 256, %s180_s5, [#allocation4], %s257_s2, %s257_s2, %s258_s6  }
  0xb8   :  { %253 = dma.done.wait [#allocation4], 256  }
  0xb9   :  { %254 = vsyncadd [#allocation4], 4294967040 }
  0xba   :  { %190 = vsyncpa [#allocation4], 1 }

// kernel: attention_forward.4
= control target key start
LH: loop header
LB: loop body
LE: loop exit
PB: predicated region body
PF: predicated region fallthrough
CT: control target
= control target key end

     0   :  { %s715_s12 = smov 0   ;;  %s717_s13 = smov 0   ;;  %s789_s0 = inlined_call_operand.vmem [shape: bf16[3,4,2,8,8], index: 0, kind: input, shape index: {}, may-alias: {0,1,2}]   ;;  %s790_s1 = inlined_call_operand.vmem [shape: bf16[3,4,2,8,8], index: 1, kind: input, shape index: {}, may-alias: {0,1,2}]   ;;  %s791_s2 = inlined_call_operand.vmem [shape: bf16[3,4,2,8,8], index: 2, kind: input, shape index: {}, may-alias: {0,1,2}]   ;;  %s792_s3 = inlined_call_operand.vmem [shape: bf16[4,2,8,8], index: 3, kind: output, shape index: {}]  }
   0x1   :  { %s719_s14 = smov 0   ;;  %s721_s15 = smov 0  }
   0x2   :  { %s723_s16 = smov 0  }
   0x3 LB: > { %s35_s17 = sadd.s32 1, %s682_s14  ;;  %s39_s18 = sadd.s32 1, %s686_s15  ;;  %s690_s16 = sphi %s723_s16, %s13_s16   ;;  %s686_s15 = sphi %s721_s15, %s796_s15   ;;  %s682_s14 = sphi %s719_s14, %s795_s14   ;;  %s678_s13 = sphi %s717_s13, %s794_s13   ;;  %s674_s12 = sphi %s715_s12, %s793_s12  }
   0x4   : > { %p37_p0 = scmp.ge.s32.totalorder %s35_s17, 4  ;;  %p585_p1 = scmp.ge.s32.totalorder %s690_s16, 1 }
   0x5   : > { %p219_p2 = scmp.lt.s32.totalorder %s690_s16, 9 }
   0x6   : > { %s798_s17 = smov (%p37_p0, %s35_s17), 0  ;;  %s800_s18 = smov (!%p37_p0, %s39_s18), %s686_s15 }
   0x7   : > { %p220_p3 = pnand %p585_p1, %p219_p2  ;;  %p41_p4 = scmp.ge.s32.totalorder %s800_s18, 2 }
   0x8   : > { %p279_p5 = scmp.lt.s32.totalorder (!%p220_p3), %s674_s12, 3  ;;  %p281_p6 = scmp.lt.s32.totalorder (!%p220_p3), %s678_s13, 1 }
   0x9   : > { %s802_s18 = smov (%p41_p4, %s800_s18), 0  ;;  %223 = sbr.rel (%p220_p3) target bundleno = 629 (0x275), region = 32 }
   0xe   : > { %s804_s12 = smov (!%p279_p5, %s674_s12), 3  ;;  %s806_s13 = smov (!%p281_p6, %s678_s13), 1  ;;  %vm333_vm0 = vcmask 64512   ;;  %vm330_vm1 = vcmask 7168   ;;  %v692_v3 = vmov -inf   ;;  %v693_v7 = vmov 0  }
   0xf   : > { %s586_s19 = sshll.u32 %s804_s12, 1  ;;  %331 = vst.msk [vmem:[#allocation2] sm:$0xff] %vm330_vm1, %v692_v3  ;;  %643 = vset.pattern.permute.xlu0 %v693_v7  ;;  %644 = vset.pattern.permute.xlu1 %v693_v7  ;;  %v694_v8 = vmov 0.0   ;;  %vm393_vm2 = vcmask 1043456   ;;  %vm426_vm3 = vcmask 60416  }
  0x10   : > { %s287_s20 = sadd.s32 %s586_s19, %s806_s13  ;;  %645 = vset.pattern.permute.xlu2 %v693_v7  ;;  %332 = vst.msk [vmem:[#allocation3] sm:$0xff] %vm330_vm1, %v694_v8 }
  0x11   : > { %s745_s21 = sshll.u32 %s287_s20, 2  ;;  %334 = vst.msk [vmem:[#allocation4] sm:$0xff] %vm333_vm0, %v694_v8 }
  0x12   : > { %s509_s24 = scalar_lea.vmem %s790_s1, %s745_s21  ;;  %s289_s27 = scalar_lea.vmem %s789_s0, %s745_s21 }
  0x13   : > { %v594_v0 = vld [vmem:[%s509_s24 + $0x20] sm:$0xf]  ;;  %s515_s30 = scalar_lea.vmem %s791_s2, %s745_s21  ;;  %s324_s6 = scalar_lea.vmem %s792_s3, %s745_s21 }
  0x14   : > { %v343_v1 = vsel %vm333_vm0, %v594_v0, 0  ;;  %v335_v2 = vld [vmem:[%s289_s27] sm:$0xf] }
  0x15   : > { %352 = vmatpush.bf16.xpose.msra.mxu0 %v343_v1  ;;  %v595_v13 = vld [vmem:[%s515_s30 + $0x40] sm:$0xf] }
  0x16   : > { %v358_v9 = vld [vmem:[#allocation2] sm:$0xff]  ;;  %v395_v14 = vsel %vm393_vm2, %v595_v13, 0 }
  0x17   : > { %404 = vmatpush.bf16.msra.mxu1 %v395_v14  ;;  %v374_v23 = vld [vmem:[#allocation3] sm:$0xff] }
  0x18   : > { %v382_v31 = vld [vmem:[#allocation4] sm:$0xff] }
  0x1c   : > { %596 = vmatmul.msk.bf16.vlgmr.msra.gmra.mxu0 %vm333_vm0, %v335_v2 }
  0x99   : > { %v354_v4 = vpop.f32.mrf.mxu0 }
  0x9a   : > { %v359_v5 = vsel %vm333_vm0, %v354_v4, -inf }
  0x9b   : > { %360 = vmax.xlane.f32.xlu0 %v359_v5 }
  0xa1   : > { %v356_v6 = vpop.f32.mrf.mxu0 }
 0x10e   : > { %v361_v10 = vpop.xlane.xlu0 %360 }
 0x10f   : > { %v362_v11 = vmax.f32 %v358_v9, %v361_v10 }
 0x111   : > { %v363_v12 = vsub.f32 %v358_v9, %v362_v11  ;;  %412 = vst.msk [vmem:[#allocation2] sm:$0xff] %vm330_vm1, %v362_v11  ;;  %368 = vperm.xlu0 %643, %v362_v11  }
 0x113   : > { %v364_v21 = vmul.f32 1.442695, %v363_v12 }
 0x183   : > { %v369_v15 = vpop.permute.xlu0 %368 }
 0x184   : > { %v371_v16 = vsub.f32 %v354_v4, %v369_v15 }
 0x186   : > { %v372_v17 = vmul.f32 1.442695, %v371_v16 }
 0x188   : > { %646 = vpow2.f32 %v372_v17 }
 0x189   : > { %648 = vpow2.f32 %v364_v21 }
 0x18e   : > { %v647_v18 = vpop.eup %646 }
 0x18f   : > { %v376_v19 = vsel %vm333_vm0, %v647_v18, 0.0  ;;  %v389_v20 = vpack.c.bf16 %v647_v18, %v647_v18  ;;  %v649_v22 = vpop.eup %648 }
 0x190   : > { %377 = vadd.xlane.f32.xlu1 %v376_v19  ;;  %v375_v24 = vmul.f32 %v649_v22, %v374_v23 }
 0x191   : > { %597 = vmatmul.msk.bf16.vlgmr.msra.gmra.mxu1 %vm333_vm0, %v389_v20 }
 0x1a9   : > { %385 = vperm.xlu1 %644, %v649_v22  }
 0x203   : > { %v378_v25 = vpop.xlane.xlu1 %377 }
 0x204   : > { %v379_v26 = vadd.f32 %v378_v25, %v375_v24 }
 0x206   : > { %381 = vst.msk [vmem:[#allocation3] sm:$0xff] %vm330_vm1, %v379_v26 }
 0x20d   : > { %v416_v27 = vld [vmem:[#allocation3] sm:$0xff] }
 0x20e   : > { %v406_v28 = vpop.f32.mrf.mxu1  ;;  %650 = vrcp.f32 %v416_v27 }
 0x214   : > { %v651_v29 = vpop.eup %650 }
 0x215   : > { %421 = vperm.xlu2 %645, %v651_v29  }
 0x216   : > { %v408_v30 = vpop.f32.mrf.mxu1 }
 0x21b   : > { %v386_v32 = vpop.permute.xlu1 %385 }
 0x21c   : > { %v388_v33 = vmul.f32 %v386_v32, %v382_v31 }
 0x21e   : > { %v410_v34 = vadd.f32 %v406_v28, %v388_v33 }
 0x220   : > { %411 = vst.msk [vmem:[#allocation4] sm:$0xff] %vm333_vm0, %v410_v34 }
 0x227   : > { %v418_v35 = vld [vmem:[#allocation4] sm:$0xff] }
 0x26f   : > { %v422_v36 = vpop.permute.xlu2 %421 }
 0x270   : > { %v424_v37 = vmul.f32 %v422_v36, %v418_v35 }
 0x272   : > { %v425_v38 = vpack.c.bf16 %v424_v37, %v424_v37 }
 0x274   : > { %427 = vst.msk [vmem:[%s324_s6] sm:$0xf] %vm426_vm3, %v425_v38 }
 0x275 PF: > { %s13_s16 = sadd.s32 1, %s690_s16   ;;  %s793_s12 = smov %s682_s14 }
 0x276   : > { %p10_p7 = scmp.ge.s32.totalorder %s13_s16, 10   ;;  %s794_s13 = smov %s686_s15 }
 0x277   : > { %s795_s14 = smov %s798_s17  ;;  %s796_s15 = smov %s802_s18 }
 0x278   :  { %12 = sbr.rel (!%p10_p7) target bundleno = 3 (0x3), region = 76 }

// kernel: attention_forward.3
= control target key start
LH: loop header
LB: loop body
LE: loop exit
PB: predicated region body
PF: predicated region fallthrough
CT: control target
= control target key end

     0   :  { %vm69_vm0 = vcmask 261120   ;;  %vm19_vm1 = vcmask 64512   ;;  %v856_v20 = vmov 0.0   ;;  %vm633_vm2 = vcmask 60416   ;;  %s1158_s1 = inlined_call_operand.vmem [shape: bf16[12,32,8], index: 1, kind: input, shape index: {}]   ;;  %s1159_s0 = inlined_call_operand.vmem [shape: bf16[16,32], index: 0, kind: input, shape index: {}]   ;;  %s1160_s2 = inlined_call_operand.vmem [shape: f32[12,1,8], index: 2, kind: input, shape index: {}]   ;;  %s1161_s3 = inlined_call_operand.vmem [shape: bf16[12,16,8], index: 3, kind: output, shape index: {}]  }
   0x1   :  { %v820_v0 = vld [vmem:[%s1158_s1 + $0x8] sm:$0xff]  ;;  %v822_v1 = vld [vmem:[%s1158_s1 + $0x18] sm:$0xff]  ;;  %v819_v4 = vld [vmem:[%s1158_s1] sm:$0xff]  ;;  %20 = vst.msk [vmem:[#allocation2] sm:$0xff] %vm19_vm1, %v856_v20 }
   0x2   :  { %v824_v2 = vld [vmem:[%s1158_s1 + $0x28] sm:$0xff]  ;;  %v826_v3 = vld [vmem:[%s1158_s1 + $0x38] sm:$0xff]  ;;  %79 = vmatpush.bf16.msra.mxu0 %v820_v0  ;;  %118 = vmatpush.bf16.msra.mxu1 %v822_v1  ;;  %v821_v5 = vld [vmem:[%s1158_s1 + $0x10] sm:$0xff]  ;;  %21 = vst.msk [vmem:[#allocation2 + $0x8] sm:$0xff] %vm19_vm1, %v856_v20 }
   0x3   :  { %156 = vmatpush.bf16.msra.mxu2 %v824_v2  ;;  %194 = vmatpush.bf16.msra.mxu3 %v826_v3  ;;  %v823_v6 = vld [vmem:[%s1158_s1 + $0x20] sm:$0xff]  ;;  %v825_v7 = vld [vmem:[%s1158_s1 + $0x30] sm:$0xff]  ;;  %v832_v8 = vld [vmem:[%s1158_s1 + $0x68] sm:$0xff]  ;;  %22 = vst.msk [vmem:[#allocation2 + $0x10] sm:$0xff] %vm19_vm1, %v856_v20 }
   0x4   :  { %v834_v9 = vld [vmem:[%s1158_s1 + $0x78] sm:$0xff]  ;;  %v910_v10 = vld [vmem:[%s1159_s0] sm:$0xff]  ;;  %v828_v11 = vld [vmem:[%s1158_s1 + $0x48] sm:$0xff]  ;;  %23 = vst.msk [vmem:[#allocation2 + $0x18] sm:$0xff] %vm19_vm1, %v856_v20 }
   0x5   :  { %v830_v12 = vld [vmem:[%s1158_s1 + $0x58] sm:$0xff]  ;;  %v831_v13 = vld [vmem:[%s1158_s1 + $0x60] sm:$0xff]  ;;  %v833_v14 = vld [vmem:[%s1158_s1 + $0x70] sm:$0xff]  ;;  %24 = vst.msk [vmem:[#allocation2 + $0x20] sm:$0xff] %vm19_vm1, %v856_v20 }
   0x6   :  { %80 = vmatpush.bf16.msra.mxu0 %v819_v4  ;;  %119 = vmatpush.bf16.msra.mxu1 %v821_v5  ;;  %v840_v15 = vld [vmem:[%s1158_s1 + $0xa8] sm:$0xff]  ;;  %v842_v16 = vld [vmem:[%s1158_s1 + $0xb8] sm:$0xff]  ;;  %v827_v17 = vld [vmem:[%s1158_s1 + $0x40] sm:$0xff]  ;;  %25 = vst.msk [vmem:[#allocation2 + $0x28] sm:$0xff] %vm19_vm1, %v856_v20 }
   0x7   :  { %157 = vmatpush.bf16.msra.mxu2 %v823_v6  ;;  %195 = vmatpush.bf16.msra.mxu3 %v825_v7  ;;  %v829_v18 = vld [vmem:[%s1158_s1 + $0x50] sm:$0xff]  ;;  %v836_v19 = vld [vmem:[%s1158_s1 + $0x88] sm:$0xff]  ;;  %v838_v21 = vld [vmem:[%s1158_s1 + $0x98] sm:$0xff]  ;;  %26 = vst.msk [vmem:[#allocation2 + $0x30] sm:$0xff] %vm19_vm1, %v856_v20 }
   0x8   :  { %v839_v22 = vld [vmem:[%s1158_s1 + $0xa0] sm:$0xff]  ;;  %v841_v23 = vld [vmem:[%s1158_s1 + $0xb0] sm:$0xff]  ;;  %27 = vst.msk [vmem:[#allocation2 + $0x38] sm:$0xff] %vm19_vm1, %v856_v20 }
   0x9   :  { %674 = vmatmul.msk.bf16.vlgmr.msra.gmra.mxu0 %vm69_vm0, %v910_v10  ;;  %687 = vmatmul.msk.bf16.vlgmr.msra.gmra.mxu1 %vm69_vm0, %v910_v10  ;;  %v835_v24 = vld [vmem:[%s1158_s1 + $0x80] sm:$0xff]  ;;  %v837_v25 = vld [vmem:[%s1158_s1 + $0x90] sm:$0xff]  ;;  %28 = vst.msk [vmem:[#allocation2 + $0x40] sm:$0xff] %vm19_vm1, %v856_v20  ;;  %v47_v34 = vld [vmem:[#allocation2 + $0x8] sm:$0xff] }
   0xa   :  { %700 = vmatmul.msk.bf16.vlgmr.msra.gmra.mxu2 %vm69_vm0, %v910_v10  ;;  %713 = vmatmul.msk.bf16.vlgmr.msra.gmra.mxu3 %vm69_vm0, %v910_v10  ;;  %29 = vst.msk [vmem:[#allocation2 + $0x48] sm:$0xff] %vm19_vm1, %v856_v20  ;;  %v46_v26 = vld [vmem:[#allocation2] sm:$0xff]  ;;  %v93_v27 = vld [vmem:[#allocation2 + $0x10] sm:$0xff] }
   0xb   :  { %308 = vmatpush.bf16.msrb.mxu2 %v832_v8  ;;  %346 = vmatpush.bf16.msrb.mxu3 %v834_v9  ;;  %30 = vst.msk [vmem:[#allocation2 + $0x50] sm:$0xff] %vm19_vm1, %v856_v20  ;;  %v94_v35 = vld [vmem:[#allocation2 + $0x18] sm:$0xff]  ;;  %v844_v36 = vld [vmem:[%s1160_s2] ss:$0 sm:$0xff]  ;;  %v845_v39 = vld [vmem:[%s1160_s2 + $0x1] ss:$0 sm:$0xff] }
   0xc   :  { %232 = vmatpush.bf16.msrb.mxu0 %v828_v11  ;;  %270 = vmatpush.bf16.msrb.mxu1 %v830_v12  ;;  %31 = vst.msk [vmem:[#allocation2 + $0x58] sm:$0xff] %vm19_vm1, %v856_v20  ;;  %v131_v32 = vld [vmem:[#allocation2 + $0x20] sm:$0xff] }
   0xd   :  { %32 = vst.msk [vmem:[#allocation2 + $0x60] sm:$0xff] %vm19_vm1, %v856_v20  ;;  %v132_v51 = vld [vmem:[#allocation2 + $0x28] sm:$0xff]  ;;  %v846_v54 = vld [vmem:[%s1160_s2 + $0x2] ss:$0 sm:$0xff]  ;;  %v847_v57 = vld [vmem:[%s1160_s2 + $0x3] ss:$0 sm:$0xff] }
   0xe   :  { %33 = vst.msk [vmem:[#allocation2 + $0x68] sm:$0xff] %vm19_vm1, %v856_v20  ;;  %v169_v33 = vld [vmem:[#allocation2 + $0x30] sm:$0xff] }
   0xf   :  { %309 = vmatpush.bf16.msrb.mxu2 %v831_v13  ;;  %347 = vmatpush.bf16.msrb.mxu3 %v833_v14  ;;  %34 = vst.msk [vmem:[#allocation2 + $0x70] sm:$0xff] %vm19_vm1, %v856_v20  ;;  %v170_v52 = vld [vmem:[#allocation2 + $0x38] sm:$0xff] }
  0x10   :  { %233 = vmatpush.bf16.msrb.mxu0 %v827_v17  ;;  %271 = vmatpush.bf16.msrb.mxu1 %v829_v18  ;;  %35 = vst.msk [vmem:[#allocation2 + $0x78] sm:$0xff] %vm19_vm1, %v856_v20  ;;  %v207_v55 = vld [vmem:[#allocation2 + $0x40] sm:$0xff] }
  0x11   :  { %36 = vst.msk [vmem:[#allocation2 + $0x80] sm:$0xff] %vm19_vm1, %v856_v20 }
  0x12   :  { %37 = vst.msk [vmem:[#allocation2 + $0x88] sm:$0xff] %vm19_vm1, %v856_v20  ;;  %v245_v56 = vld [vmem:[#allocation2 + $0x50] sm:$0xff] }
  0x13   :  { %460 = vmatpush.bf16.msra.mxu2 %v840_v15  ;;  %498 = vmatpush.bf16.msra.mxu3 %v842_v16  ;;  %38 = vst.msk [vmem:[#allocation2 + $0x90] sm:$0xff] %vm19_vm1, %v856_v20  ;;  %v208_v15 = vld [vmem:[#allocation2 + $0x48] sm:$0xff]  ;;  %v246_v16 = vld [vmem:[#allocation2 + $0x58] sm:$0xff] }
  0x14   :  { %384 = vmatpush.bf16.msra.mxu0 %v836_v19  ;;  %422 = vmatpush.bf16.msra.mxu1 %v838_v21  ;;  %39 = vst.msk [vmem:[#allocation2 + $0x98] sm:$0xff] %vm19_vm1, %v856_v20  ;;  %v283_v12 = vld [vmem:[#allocation2 + $0x60] sm:$0xff] }
  0x15   :  { %40 = vst.msk [vmem:[#allocation2 + $0xa0] sm:$0xff] %vm19_vm1, %v856_v20 }
  0x16   :  { %41 = vst.msk [vmem:[#allocation2 + $0xa8] sm:$0xff] %vm19_vm1, %v856_v20  ;;  %v321_v13 = vld [vmem:[#allocation2 + $0x70] sm:$0xff] }
  0x17   :  { %461 = vmatpush.bf16.msra.mxu2 %v839_v22  ;;  %499 = vmatpush.bf16.msra.mxu3 %v841_v23  ;;  %42 = vst.msk [vmem:[#allocation2 + $0xb0] sm:$0xff] %vm19_vm1, %v856_v20 }
  0x18   :  { %385 = vmatpush.bf16.msra.mxu0 %v835_v24  ;;  %423 = vmatpush.bf16.msra.mxu1 %v837_v25  ;;  %43 = vst.msk [vmem:[#allocation2 + $0xb8] sm:$0xff] %vm19_vm1, %v856_v20  ;;  %v848_v20 = vld [vmem:[%s1160_s2 + $0x4] ss:$0 sm:$0xff] }
  0x19   :  { %726 = vmatmul.msk.bf16.vlgmr.msrb.gmra.mxu0 %vm69_vm0, %v910_v10  ;;  %739 = vmatmul.msk.bf16.vlgmr.msrb.gmra.mxu1 %vm69_vm0, %v910_v10 }
  0x1a   :  { %752 = vmatmul.msk.bf16.vlgmr.msrb.gmra.mxu2 %vm69_vm0, %v910_v10  ;;  %765 = vmatmul.msk.bf16.vlgmr.msrb.gmra.mxu3 %vm69_vm0, %v910_v10 }
  0x29   :  { %778 = vmatmul.msk.bf16.vlgmr.msra.gmra.mxu0 %vm69_vm0, %v910_v10  ;;  %791 = vmatmul.msk.bf16.vlgmr.msra.gmra.mxu1 %vm69_vm0, %v910_v10 }
  0x2a   :  { %804 = vmatmul.msk.bf16.vlgmr.msra.gmra.mxu2 %vm69_vm0, %v910_v10  ;;  %817 = vmatmul.msk.bf16.vlgmr.msra.gmra.mxu3 %vm69_vm0, %v910_v10 }
  0x86   :  { %v82_v28 = vpop.f32.mrf.mxu0  ;;  %v121_v29 = vpop.f32.mrf.mxu1 }
  0x87   :  { %v87_v30 = vadd.f32 %v82_v28, %v46_v26  ;;  %v126_v31 = vadd.f32 %v121_v29, %v93_v27  ;;  %v849_v26 = vld [vmem:[%s1160_s2 + $0x5] ss:$0 sm:$0xff] }
  0x89   :  { %90 = vst.msk [vmem:[#allocation2] sm:$0xff] %vm19_vm1, %v87_v30 }
  0x8a   :  { %128 = vst.msk [vmem:[#allocation2 + $0x10] sm:$0xff] %vm19_vm1, %v126_v31 }
  0x8d   :  { %v159_v37 = vpop.f32.mrf.mxu2  ;;  %v197_v38 = vpop.f32.mrf.mxu3 }
  0x8e   :  { %v164_v40 = vadd.f32 %v159_v37, %v131_v32  ;;  %v202_v41 = vadd.f32 %v197_v38, %v169_v33  ;;  %v84_v42 = vpop.f32.mrf.mxu0  ;;  %v123_v43 = vpop.f32.mrf.mxu1  ;;  %v284_v38 = vld [vmem:[#allocation2 + $0x68] sm:$0xff] }
  0x8f   :  { %v88_v44 = vadd.f32 %v84_v42, %v47_v34  ;;  %v127_v45 = vadd.f32 %v123_v43, %v94_v35  ;;  %v359_v42 = vld [vmem:[#allocation2 + $0x80] sm:$0xff]  ;;  %v397_v43 = vld [vmem:[#allocation2 + $0x90] sm:$0xff] }
  0x90   :  { %v513_v46 = vld [vmem:[#allocation2] sm:$0xff]  ;;  %166 = vst.msk [vmem:[#allocation2 + $0x20] sm:$0xff] %vm19_vm1, %v164_v40 }
  0x91   :  { %v585_v47 = vadd.f32 %v844_v36, %v513_v46  ;;  %v515_v48 = vld [vmem:[#allocation2 + $0x10] sm:$0xff]  ;;  %204 = vst.msk [vmem:[#allocation2 + $0x30] sm:$0xff] %vm19_vm1, %v202_v41  ;;  %v850_v41 = vld [vmem:[%s1160_s2 + $0x6] ss:$0 sm:$0xff] }
  0x92   :  { %v587_v49 = vadd.f32 %v845_v39, %v515_v48  ;;  %91 = vst.msk [vmem:[#allocation2 + $0x8] sm:$0xff] %vm19_vm1, %v88_v44 }
  0x93   :  { %v609_v50 = vpack.c.bf16 %v585_v47, %v585_v47  ;;  %129 = vst.msk [vmem:[#allocation2 + $0x18] sm:$0xff] %vm19_vm1, %v127_v45  ;;  %v851_v45 = vld [vmem:[%s1160_s2 + $0x7] ss:$0 sm:$0xff] }
  0x94   :  { %v611_v53 = vpack.c.bf16 %v587_v49, %v587_v49 }
  0x95   :  { %634 = vst.msk [vmem:[%s1161_s3] sm:$0xf] %vm633_vm2, %v609_v50  ;;  %v161_v58 = vpop.f32.mrf.mxu2  ;;  %v199_v59 = vpop.f32.mrf.mxu3 }
  0x96   :  { %636 = vst.msk [vmem:[%s1161_s3 + $0x8] sm:$0xf] %vm633_vm2, %v611_v53  ;;  %v165_v60 = vadd.f32 %v161_v58, %v132_v51  ;;  %v203_v61 = vadd.f32 %v199_v59, %v170_v52  ;;  %v235_v62 = vpop.f32.mrf.mxu0  ;;  %v273_v63 = vpop.f32.mrf.mxu1 }
  0x97   :  { %v517_v0 = vld [vmem:[#allocation2 + $0x20] sm:$0xff]  ;;  %v240_v1 = vadd.f32 %v235_v62, %v207_v55  ;;  %v278_v2 = vadd.f32 %v273_v63, %v245_v56 }
  0x98   :  { %v589_v3 = vadd.f32 %v846_v54, %v517_v0  ;;  %v519_v4 = vld [vmem:[#allocation2 + $0x30] sm:$0xff]  ;;  %167 = vst.msk [vmem:[#allocation2 + $0x28] sm:$0xff] %vm19_vm1, %v165_v60  ;;  %v435_v0 = vld [vmem:[#allocation2 + $0xa0] sm:$0xff] }
  0x99   :  { %v591_v5 = vadd.f32 %v847_v57, %v519_v4  ;;  %v514_v6 = vld [vmem:[#allocation2 + $0x8] sm:$0xff]  ;;  %205 = vst.msk [vmem:[#allocation2 + $0x38] sm:$0xff] %vm19_vm1, %v203_v61  ;;  %v398_v4 = vld [vmem:[#allocation2 + $0x98] sm:$0xff] }
  0x9a   :  { %v613_v7 = vpack.c.bf16 %v589_v3, %v589_v3  ;;  %v586_v8 = vadd.f32 %v844_v36, %v514_v6  ;;  %v516_v9 = vld [vmem:[#allocation2 + $0x18] sm:$0xff]  ;;  %242 = vst.msk [vmem:[#allocation2 + $0x40] sm:$0xff] %vm19_vm1, %v240_v1  ;;  %v473_v1 = vld [vmem:[#allocation2 + $0xb0] sm:$0xff]  ;;  %v360_v3 = vld [vmem:[#allocation2 + $0x88] sm:$0xff] }
  0x9b   :  { %v615_v10 = vpack.c.bf16 %v591_v5, %v591_v5  ;;  %v588_v11 = vadd.f32 %v845_v39, %v516_v9  ;;  %280 = vst.msk [vmem:[#allocation2 + $0x50] sm:$0xff] %vm19_vm1, %v278_v2  ;;  %v322_v39 = vld [vmem:[#allocation2 + $0x78] sm:$0xff] }
  0x9c   :  { %638 = vst.msk [vmem:[%s1161_s3 + $0x10] sm:$0xf] %vm633_vm2, %v613_v7  ;;  %v610_v14 = vpack.c.bf16 %v586_v8, %v586_v8  ;;  %v852_v8 = vld [vmem:[%s1160_s2 + $0x8] ss:$0 sm:$0xff] }
  0x9d   :  { %640 = vst.msk [vmem:[%s1161_s3 + $0x18] sm:$0xf] %vm633_vm2, %v615_v10  ;;  %v612_v17 = vpack.c.bf16 %v588_v11, %v588_v11  ;;  %v311_v18 = vpop.f32.mrf.mxu2  ;;  %v349_v19 = vpop.f32.mrf.mxu3 }
  0x9e   :  { %635 = vst.msk [vmem:[%s1161_s3 + $0x4] sm:$0xf] %vm633_vm2, %v610_v14  ;;  %v316_v21 = vadd.f32 %v311_v18, %v283_v12  ;;  %v354_v22 = vadd.f32 %v349_v19, %v321_v13  ;;  %v237_v23 = vpop.f32.mrf.mxu0  ;;  %v275_v24 = vpop.f32.mrf.mxu1  ;;  %v853_v14 = vld [vmem:[%s1160_s2 + $0x9] ss:$0 sm:$0xff] }
  0x9f   :  { %637 = vst.msk [vmem:[%s1161_s3 + $0xc] sm:$0xf] %vm633_vm2, %v612_v17  ;;  %v518_v25 = vld [vmem:[#allocation2 + $0x28] sm:$0xff]  ;;  %v241_v27 = vadd.f32 %v237_v23, %v208_v15  ;;  %v279_v28 = vadd.f32 %v275_v24, %v246_v16 }
  0xa0   :  { %v590_v29 = vadd.f32 %v846_v54, %v518_v25  ;;  %v520_v30 = vld [vmem:[#allocation2 + $0x38] sm:$0xff]  ;;  %318 = vst.msk [vmem:[#allocation2 + $0x60] sm:$0xff] %vm19_vm1, %v316_v21 }
  0xa1   :  { %v592_v31 = vadd.f32 %v847_v57, %v520_v30  ;;  %v521_v32 = vld [vmem:[#allocation2 + $0x40] sm:$0xff]  ;;  %356 = vst.msk [vmem:[#allocation2 + $0x70] sm:$0xff] %vm19_vm1, %v354_v22 }
  0xa2   :  { %v614_v33 = vpack.c.bf16 %v590_v29, %v590_v29  ;;  %v593_v34 = vadd.f32 %v848_v20, %v521_v32  ;;  %v523_v35 = vld [vmem:[#allocation2 + $0x50] sm:$0xff]  ;;  %243 = vst.msk [vmem:[#allocation2 + $0x48] sm:$0xff] %vm19_vm1, %v241_v27  ;;  %v474_v27 = vld [vmem:[#allocation2 + $0xb8] sm:$0xff]  ;;  %v854_v29 = vld [vmem:[%s1160_s2 + $0xa] ss:$0 sm:$0xff] }
  0xa3   :  { %v616_v36 = vpack.c.bf16 %v592_v31, %v592_v31  ;;  %v595_v37 = vadd.f32 %v849_v26, %v523_v35  ;;  %281 = vst.msk [vmem:[#allocation2 + $0x58] sm:$0xff] %vm19_vm1, %v279_v28  ;;  %v855_v31 = vld [vmem:[%s1160_s2 + $0xb] ss:$0 sm:$0xff] }
  0xa4   :  { %639 = vst.msk [vmem:[%s1161_s3 + $0x14] sm:$0xf] %vm633_vm2, %v614_v33  ;;  %v617_v40 = vpack.c.bf16 %v593_v34, %v593_v34 }
  0xa5   :  { %641 = vst.msk [vmem:[%s1161_s3 + $0x1c] sm:$0xf] %vm633_vm2, %v616_v36  ;;  %v619_v44 = vpack.c.bf16 %v595_v37, %v595_v37  ;;  %v313_v46 = vpop.f32.mrf.mxu2  ;;  %v351_v47 = vpop.f32.mrf.mxu3 }
  0xa6   :  { %642 = vst.msk [vmem:[%s1161_s3 + $0x20] sm:$0xf] %vm633_vm2, %v617_v40  ;;  %v317_v48 = vadd.f32 %v313_v46, %v284_v38  ;;  %v355_v49 = vadd.f32 %v351_v47, %v322_v39  ;;  %v387_v50 = vpop.f32.mrf.mxu0  ;;  %v425_v51 = vpop.f32.mrf.mxu1 }
  0xa7   :  { %644 = vst.msk [vmem:[%s1161_s3 + $0x28] sm:$0xf] %vm633_vm2, %v619_v44  ;;  %v525_v52 = vld [vmem:[#allocation2 + $0x60] sm:$0xff]  ;;  %v392_v53 = vadd.f32 %v387_v50, %v359_v42  ;;  %v430_v54 = vadd.f32 %v425_v51, %v397_v43 }
  0xa8   :  { %v597_v55 = vadd.f32 %v850_v41, %v525_v52  ;;  %v527_v56 = vld [vmem:[#allocation2 + $0x70] sm:$0xff]  ;;  %319 = vst.msk [vmem:[#allocation2 + $0x68] sm:$0xff] %vm19_vm1, %v317_v48 }
  0xa9   :  { %v599_v57 = vadd.f32 %v851_v45, %v527_v56  ;;  %v522_v58 = vld [vmem:[#allocation2 + $0x48] sm:$0xff]  ;;  %357 = vst.msk [vmem:[#allocation2 + $0x78] sm:$0xff] %vm19_vm1, %v355_v49 }
  0xaa   :  { %v621_v59 = vpack.c.bf16 %v597_v55, %v597_v55  ;;  %v594_v60 = vadd.f32 %v848_v20, %v522_v58  ;;  %v524_v61 = vld [vmem:[#allocation2 + $0x58] sm:$0xff]  ;;  %394 = vst.msk [vmem:[#allocation2 + $0x80] sm:$0xff] %vm19_vm1, %v392_v53 }
  0xab   :  { %v623_v62 = vpack.c.bf16 %v599_v57, %v599_v57  ;;  %v596_v63 = vadd.f32 %v849_v26, %v524_v61  ;;  %432 = vst.msk [vmem:[#allocation2 + $0x90] sm:$0xff] %vm19_vm1, %v430_v54  ;;  %v436_v26 = vld [vmem:[#allocation2 + $0xa8] sm:$0xff] }
  0xac   :  { %646 = vst.msk [vmem:[%s1161_s3 + $0x30] sm:$0xf] %vm633_vm2, %v621_v59  ;;  %v618_v2 = vpack.c.bf16 %v594_v60, %v594_v60 }
  0xad   :  { %648 = vst.msk [vmem:[%s1161_s3 + $0x38] sm:$0xf] %vm633_vm2, %v623_v62  ;;  %v620_v5 = vpack.c.bf16 %v596_v63, %v596_v63  ;;  %v463_v6 = vpop.f32.mrf.mxu2  ;;  %v501_v7 = vpop.f32.mrf.mxu3 }
  0xae   :  { %643 = vst.msk [vmem:[%s1161_s3 + $0x24] sm:$0xf] %vm633_vm2, %v618_v2  ;;  %v468_v9 = vadd.f32 %v463_v6, %v435_v0  ;;  %v506_v10 = vadd.f32 %v501_v7, %v473_v1  ;;  %v389_v11 = vpop.f32.mrf.mxu0  ;;  %v427_v12 = vpop.f32.mrf.mxu1 }
  0xaf   :  { %645 = vst.msk [vmem:[%s1161_s3 + $0x2c] sm:$0xf] %vm633_vm2, %v620_v5  ;;  %v526_v13 = vld [vmem:[#allocation2 + $0x68] sm:$0xff]  ;;  %v393_v15 = vadd.f32 %v389_v11, %v360_v3  ;;  %v431_v16 = vadd.f32 %v427_v12, %v398_v4 }
  0xb0   :  { %v598_v17 = vadd.f32 %v850_v41, %v526_v13  ;;  %v528_v18 = vld [vmem:[#allocation2 + $0x78] sm:$0xff]  ;;  %470 = vst.msk [vmem:[#allocation2 + $0xa0] sm:$0xff] %vm19_vm1, %v468_v9 }
  0xb1   :  { %v600_v19 = vadd.f32 %v851_v45, %v528_v18  ;;  %v529_v20 = vld [vmem:[#allocation2 + $0x80] sm:$0xff]  ;;  %508 = vst.msk [vmem:[#allocation2 + $0xb0] sm:$0xff] %vm19_vm1, %v506_v10 }
  0xb2   :  { %v622_v21 = vpack.c.bf16 %v598_v17, %v598_v17  ;;  %v601_v22 = vadd.f32 %v852_v8, %v529_v20  ;;  %v531_v23 = vld [vmem:[#allocation2 + $0x90] sm:$0xff]  ;;  %395 = vst.msk [vmem:[#allocation2 + $0x88] sm:$0xff] %vm19_vm1, %v393_v15 }
  0xb3   :  { %v624_v24 = vpack.c.bf16 %v600_v19, %v600_v19  ;;  %v603_v25 = vadd.f32 %v853_v14, %v531_v23  ;;  %433 = vst.msk [vmem:[#allocation2 + $0x98] sm:$0xff] %vm19_vm1, %v431_v16 }
  0xb4   :  { %647 = vst.msk [vmem:[%s1161_s3 + $0x34] sm:$0xf] %vm633_vm2, %v622_v21  ;;  %v625_v28 = vpack.c.bf16 %v601_v22, %v601_v22 }
  0xb5   :  { %649 = vst.msk [vmem:[%s1161_s3 + $0x3c] sm:$0xf] %vm633_vm2, %v624_v24  ;;  %v627_v30 = vpack.c.bf16 %v603_v25, %v603_v25  ;;  %v465_v32 = vpop.f32.mrf.mxu2  ;;  %v503_v33 = vpop.f32.mrf.mxu3 }
  0xb6   :  { %650 = vst.msk [vmem:[%s1161_s3 + $0x40] sm:$0xf] %vm633_vm2, %v625_v28  ;;  %v469_v34 = vadd.f32 %v465_v32, %v436_v26  ;;  %v507_v35 = vadd.f32 %v503_v33, %v474_v27 }
  0xb7   :  { %652 = vst.msk [vmem:[%s1161_s3 + $0x48] sm:$0xf] %vm633_vm2, %v627_v30  ;;  %v533_v36 = vld [vmem:[#allocation2 + $0xa0] sm:$0xff] }
  0xb8   :  { %v605_v37 = vadd.f32 %v854_v29, %v533_v36  ;;  %v535_v38 = vld [vmem:[#allocation2 + $0xb0] sm:$0xff]  ;;  %471 = vst.msk [vmem:[#allocation2 + $0xa8] sm:$0xff] %vm19_vm1, %v469_v34 }
  0xb9   :  { %v607_v39 = vadd.f32 %v855_v31, %v535_v38  ;;  %v530_v40 = vld [vmem:[#allocation2 + $0x88] sm:$0xff]  ;;  %509 = vst.msk [vmem:[#allocation2 + $0xb8] sm:$0xff] %vm19_vm1, %v507_v35 }
  0xba   :  { %v629_v41 = vpack.c.bf16 %v605_v37, %v605_v37  ;;  %v602_v42 = vadd.f32 %v852_v8, %v530_v40  ;;  %v532_v43 = vld [vmem:[#allocation2 + $0x98] sm:$0xff] }
  0xbb   :  { %v631_v44 = vpack.c.bf16 %v607_v39, %v607_v39  ;;  %v604_v45 = vadd.f32 %v853_v14, %v532_v43 }
  0xbc   :  { %654 = vst.msk [vmem:[%s1161_s3 + $0x50] sm:$0xf] %vm633_vm2, %v629_v41  ;;  %v626_v46 = vpack.c.bf16 %v602_v42, %v602_v42 }
  0xbd   :  { %656 = vst.msk [vmem:[%s1161_s3 + $0x58] sm:$0xf] %vm633_vm2, %v631_v44  ;;  %v628_v47 = vpack.c.bf16 %v604_v45, %v604_v45 }
  0xbe   :  { %651 = vst.msk [vmem:[%s1161_s3 + $0x44] sm:$0xf] %vm633_vm2, %v626_v46 }
  0xbf   :  { %653 = vst.msk [vmem:[%s1161_s3 + $0x4c] sm:$0xf] %vm633_vm2, %v628_v47  ;;  %v534_v48 = vld [vmem:[#allocation2 + $0xa8] sm:$0xff] }
  0xc0   :  { %v606_v49 = vadd.f32 %v854_v29, %v534_v48  ;;  %v536_v50 = vld [vmem:[#allocation2 + $0xb8] sm:$0xff] }
  0xc1   :  { %v608_v51 = vadd.f32 %v855_v31, %v536_v50 }
  0xc2   :  { %v630_v52 = vpack.c.bf16 %v606_v49, %v606_v49 }
  0xc3   :  { %v632_v53 = vpack.c.bf16 %v608_v51, %v608_v51 }
  0xc4   :  { %655 = vst.msk [vmem:[%s1161_s3 + $0x54] sm:$0xf] %vm633_vm2, %v630_v52 }
  0xc5   :  { %657 = vst.msk [vmem:[%s1161_s3 + $0x5c] sm:$0xf] %vm633_vm2, %v632_v53 }

</bundles_post_ra>
